<compile_context>
chip_gen: v5e
topology: v5e:2x2
jax: 0.10.0
libtpu: 0.0.40
codegen_flags: <defaults>
</compile_context>

<pallas_src>
import functools

import jax
import jax.numpy as jnp
import numpy as np
from jax.experimental import pallas as pl
from jax.experimental.pallas import tpu as pltpu

BN_EPS = 1e-5


def _round_up(x, m):
    return ((x + m - 1) // m) * m


def _choose_gpb(G, N, *, target_rows=256, min_steps=2):
    """Smallest divisor of G giving rows >= target_rows while keeping >= min_steps grid steps."""
    divisors = [d for d in range(1, G + 1) if G % d == 0 and G // d >= min_steps]
    if not divisors:
        return G
    for d in divisors:
        if d * N >= target_rows:
            return d
    return divisors[-1]


# -----------------------------------------------------------------------------
# Fused kernel: all GCN layers for one block of graphs (rows = gpb*N node rows).
# -----------------------------------------------------------------------------
def _gcn_fused_kernel(n_layers, f_pad, adj_ref, x_ref, wcat_ref, aff_ref, out_ref):
    """adj_ref : (rows, rows) bf16 block-diagonal adjacency (self-loops included)
    x_ref   : (rows, f_pad) bf16 node features (graphs flattened into rows)
    wcat_ref: (L, f_pad, 2*f_pad) bf16, per layer [W | Wres]
    aff_ref : (L, 4, f_pad) f32, per layer [b; bres; bn_scale; bn_shift]
    out_ref : (rows, f_pad) f32
    """
    adj = adj_ref[...]                       # bf16, exact 0/1
    x = x_ref[...]                           # bf16

    out = None
    for li in range(n_layers):
        wcat = wcat_ref[li]                  # (f_pad, 2*f_pad) bf16
        aff = aff_ref[li]                    # (4, f_pad) f32
        b, bres = aff[0:1, :], aff[1:2, :]
        scale, shift = aff[2:3, :], aff[3:4, :]

        # One lane-dense projection for both branches: [X@W | X@Wres], f32 acc.
        p = jnp.dot(x, wcat, preferred_element_type=jnp.float32)    # (rows, 2F)
        xw = p[:, :f_pad].astype(jnp.bfloat16)
        xwres = p[:, f_pad:]

        # Aggregation as ONE block-diag matmul: A @ (X @ W) == (A @ X) @ W.
        agg = jnp.dot(adj, xw, preferred_element_type=jnp.float32)  # (rows, F)

        y = jnp.maximum(agg + b, 0.0)        # GraphConv bias + relu
        r = jnp.maximum(xwres + bres, 0.0)   # residual Linear + relu
        out = (y + r) * scale + shift        # dropout(p=0)=id; eval BatchNorm1d
        x = out.astype(jnp.bfloat16)         # next layer's matmul operand

    out_ref[...] = out


# -----------------------------------------------------------------------------
# Parameter packing / padding (all feature dims padded to a common 128-multiple).
# -----------------------------------------------------------------------------
def _pack_params(layers, f_pad):
    wcats, affs = [], []
    for l in layers:
        fin, two_fout = l["wcat"].shape
        fout = two_fout // 2
        w, wres = l["wcat"][:, :fout], l["wcat"][:, fout:]
        w_p = jnp.zeros((f_pad, f_pad), jnp.float32).at[:fin, :fout].set(w)
        wr_p = jnp.zeros((f_pad, f_pad), jnp.float32).at[:fin, :fout].set(wres)
        wcats.append(jnp.concatenate([w_p, wr_p], axis=1))            # (F, 2F)
        affs.append(jnp.zeros((4, f_pad), jnp.float32).at[:, :fout].set(l["aff"]))
    # Zero-padding is exact: padded W rows/cols, biases, scale, shift are all 0,
    # so padded feature columns stay exactly 0 through every layer.
    wcat_all = jnp.stack(wcats).astype(jnp.bfloat16)                  # (L, F, 2F)
    aff_all = jnp.stack(affs)                                         # (L, 4, F)
    return wcat_all, aff_all


# -----------------------------------------------------------------------------
# Wrapper
# -----------------------------------------------------------------------------
def gcn_forward(adj, feats, layers, *, graphs_per_block=None):
    """adj: (G, N, N) dense adjacency with self loops; feats: (G, N, Fin)."""
    G, N, fin = feats.shape
    assert adj.shape == (G, N, N)
    assert len(layers) >= 1
    fouts = tuple(int(l["wcat"].shape[1]) // 2 for l in layers)
    f_pad = _round_up(max((fin,) + fouts), 128)
    L = len(layers)

    gpb = graphs_per_block if graphs_per_block is not None else _choose_gpb(G, N)
    assert G % gpb == 0, "G must be divisible by graphs_per_block"
    B = G // gpb
    rows = gpb * N
    assert rows % 8 == 0, "graphs_per_block * N must be a multiple of 8 sublanes"

    # Packed, padded weights (bf16) and folded BN affine (f32).
    wcat_all, aff_all = _pack_params(layers, f_pad)

    # Features: pad to f_pad lanes, flatten graphs into matmul rows, cast bf16.
    x = jnp.zeros((G, N, f_pad), jnp.float32).at[:, :, :fin].set(feats)
    x = x.reshape(G * N, f_pad).astype(jnp.bfloat16)

    # Block-diagonal adjacency per grid block (exact 0/1 -> bf16 is lossless).
    blocks = adj.reshape(B, gpb, N, N)
    eye_g = jnp.eye(gpb, dtype=adj.dtype)
    bd = blocks[:, :, None, :, :] * eye_g[None, :, :, None, None]    # (B,g,h,N,N)
    bd = bd.transpose(0, 1, 3, 2, 4).reshape(B * rows, rows).astype(jnp.bfloat16)

    # VMEM budget: double-buffered per-step blocks + resident weights + headroom.
    step_bytes = rows * rows * 2 + rows * f_pad * 2 + rows * f_pad * 4
    weight_bytes = wcat_all.size * 2 + aff_all.size * 4
    need = 2 * (2 * step_bytes + weight_bytes) + (4 << 20)
    vmem_limit = int(min(max(need, 16 << 20), 48 << 20))   # safe on v5e/v6e/v7x

    kernel = functools.partial(_gcn_fused_kernel, L, f_pad)
    out = pl.pallas_call(
        kernel,
        out_shape=jax.ShapeDtypeStruct((G * N, f_pad), jnp.float32),
        grid=(B,),
        in_specs=[
            pl.BlockSpec((rows, rows), lambda g: (g, 0)),       # block-diag adj
            pl.BlockSpec((rows, f_pad), lambda g: (g, 0)),      # features
            pl.BlockSpec(wcat_all.shape, lambda g: (0, 0, 0)),  # resident weights
            pl.BlockSpec(aff_all.shape, lambda g: (0, 0, 0)),   # resident affine
        ],
        out_specs=pl.BlockSpec((rows, f_pad), lambda g: (g, 0)),
        compiler_params=pltpu.CompilerParams(
            dimension_semantics=("parallel",),   # >= 2 steps per v7x TensorCore
            vmem_limit_bytes=vmem_limit,
        ),
    )(bd, x, wcat_all, aff_all)
    return out.reshape(G, N, f_pad)[:, :, : fouts[-1]]


# -----------------------------------------------------------------------------
# Parameters (eval-mode BN folded into scale/shift), packed per layer.
# -----------------------------------------------------------------------------
def init_params(key, in_feats, hidden_feats):
    layers = []
    fin = in_feats
    for i, fout in enumerate(hidden_feats):
        k = jax.random.fold_in(key, i)
        kw, kwr, kb, kbr, kg, kbeta, km, kv = jax.random.split(k, 8)
        nrm = lambda kk, shape, s=0.1: (s * jax.random.normal(kk, shape)).astype(jnp.float32)

        w = nrm(kw, (fin, fout))
        wres = nrm(kwr, (fin, fout))
        b = nrm(kb, (1, fout))
        bres = nrm(kbr, (1, fout))

        gamma = 1.0 + nrm(kg, (1, fout))
        beta = nrm(kbeta, (1, fout))
        r_mean = nrm(km, (1, fout))
        r_var = 0.5 + jax.random.uniform(kv, (1, fout), jnp.float32)
        scale = gamma / jnp.sqrt(r_var + BN_EPS)
        shift = beta - r_mean * scale

        layers.append(dict(
            wcat=jnp.concatenate([w, wres], axis=1),              # (Fin, 2*Fout)
            aff=jnp.concatenate([b, bres, scale, shift], axis=0)  # (4, Fout)
        ))
        fin = fout
    return layers


# -----------------------------------------------------------------------------
# Pure-JAX reference (unfused, per-graph aggregation). matmul_dtype controls
# the matmul-input precision: f32 = original math, bf16 = matches kernel numerics.
# -----------------------------------------------------------------------------
def gcn_forward_ref(adj, feats, layers, *, matmul_dtype=jnp.float32):
    x = feats
    for l in layers:
        fout = l["wcat"].shape[1] // 2
        w, wres = l["wcat"][:, :fout], l["wcat"][:, fout:]
        b, bres = l["aff"][0:1], l["aff"][1:2]
        scale, shift = l["aff"][2:3], l["aff"][3:4]
        xm = x.astype(matmul_dtype)
        xw = jnp.einsum("gnf,fo->gno", xm, w.astype(matmul_dtype),
                        preferred_element_type=jnp.float32)
        agg = jnp.einsum("gnm,gmo->gno", adj.astype(matmul_dtype),
                         xw.astype(matmul_dtype),
                         preferred_element_type=jnp.float32)
        y = jnp.maximum(agg + b, 0.0)
        r = jnp.maximum(jnp.einsum("gnf,fo->gno", xm, wres.astype(matmul_dtype),
                                   preferred_element_type=jnp.float32) + bres, 0.0)
        x = (y + r) * scale + shift
    return x


# -----------------------------------------------------------------------------
if __name__ == "__main__":
    # 64 small graphs (batched graph) of 16 nodes: gpb=16 -> rows=256 per block
    # (fills a v6e/v7x MXU pass), grid=4 (>= 2 steps per v7x TensorCore).
    G, N = 64, 16
    in_feats = 32               # padded to 128 lanes inside the wrapper
    hidden_feats = [128, 128]   # lane-dense outputs

    key = jax.random.PRNGKey(0)
    kp, ka, kx = jax.random.split(key, 3)

    layers = init_params(kp, in_feats, hidden_feats)

    # Random symmetric adjacency without self loops, then dgl.add_self_loop -> +I.
    a = jax.random.bernoulli(ka, 0.3, (G, N, N)).astype(jnp.float32)
    a = jnp.maximum(a, jnp.swapaxes(a, 1, 2))
    eye = jnp.eye(N, dtype=jnp.float32)[None]
    adj = a * (1.0 - eye) + eye
    feats = jax.random.normal(kx, (G, N, in_feats), jnp.float32)

    fwd = jax.jit(gcn_forward)
    out = jax.block_until_ready(fwd(adj, feats, layers))
    assert out.shape == (G, N, hidden_feats[-1])

    # Tight check vs. a numerics-matched reference (bf16 matmul inputs, f32 acc).
    ref_bf16 = gcn_forward_ref(adj, feats, layers, matmul_dtype=jnp.bfloat16)
    np.testing.assert_allclose(np.asarray(out), np.asarray(ref_bf16),
                               rtol=2e-3, atol=2e-3)

    # Loose sanity bound vs. full-f32 math (bf16 matmul inputs lose ~3 mantissa
    # bits; two stacked layers give ~1% worst-case deviation from pure f32).
    ref_f32 = gcn_forward_ref(adj, feats, layers, matmul_dtype=jnp.float32)
    np.testing.assert_allclose(np.asarray(out), np.asarray(ref_f32),
                               rtol=5e-2, atol=2.5e-1)

    print("KERNEL_OK")
</pallas_src>

<mosaic_0001>
module attributes {stable_mosaic.version = 11 : i64} {
  func.func @_gcn_fused_kernel(%arg0: i32, %arg1: memref<256x256xbf16, #tpu.memory_space<vmem>>, %arg2: memref<256x128xbf16, #tpu.memory_space<vmem>>, %arg3: memref<2x128x256xbf16, #tpu.memory_space<vmem>>, %arg4: memref<2x4x128xf32, #tpu.memory_space<vmem>>, %arg5: memref<256x128xf32, #tpu.memory_space<vmem>>) attributes {dimension_semantics = [#tpu.dimension_semantics<parallel>], iteration_bounds = array<i64: 4>, scalar_prefetch = 0 : i64, scratch_operands = 0 : i64, tpu.core_type = #tpu.core_type<tc>, window_params = [{transform_indices = @transform_0, window_bounds = array<i64: 256, 256>}, {transform_indices = @transform_1, window_bounds = array<i64: 256, 128>}, {pipeline_mode = #tpu.pipeline_mode<synchronous>, transform_indices = @transform_2, window_bounds = array<i64: 2, 128, 256>}, {pipeline_mode = #tpu.pipeline_mode<synchronous>, transform_indices = @transform_3, window_bounds = array<i64: 2, 4, 128>}, {transform_indices = @transform_4, window_bounds = array<i64: 256, 128>}]} {
    %c0 = arith.constant 0 : index
    %c0_0 = arith.constant 0 : index
    %0 = vector.load %arg1[%c0, %c0_0] : memref<256x256xbf16, #tpu.memory_space<vmem>>, vector<256x256xbf16>
    %c0_1 = arith.constant 0 : index
    %c0_2 = arith.constant 0 : index
    %1 = vector.load %arg2[%c0_1, %c0_2] : memref<256x128xbf16, #tpu.memory_space<vmem>>, vector<256x128xbf16>
    %c0_3 = arith.constant 0 : index
    %c0_4 = arith.constant 0 : index
    %c0_5 = arith.constant 0 : index
    %2 = vector.load %arg3[%c0_3, %c0_4, %c0_5] : memref<2x128x256xbf16, #tpu.memory_space<vmem>>, vector<1x128x256xbf16>
    %3 = vector.shape_cast %2 : vector<1x128x256xbf16> to vector<128x256xbf16>
    %c0_6 = arith.constant 0 : index
    %c0_7 = arith.constant 0 : index
    %c0_8 = arith.constant 0 : index
    %4 = vector.load %arg4[%c0_6, %c0_7, %c0_8] : memref<2x4x128xf32, #tpu.memory_space<vmem>>, vector<1x4x128xf32>
    %5 = vector.shape_cast %4 : vector<1x4x128xf32> to vector<4x128xf32>
    %6 = vector.extract_strided_slice %5 {offsets = [0, 0], sizes = [1, 128], strides = [1, 1]} : vector<4x128xf32> to vector<1x128xf32>
    %7 = vector.extract_strided_slice %5 {offsets = [1, 0], sizes = [1, 128], strides = [1, 1]} : vector<4x128xf32> to vector<1x128xf32>
    %8 = vector.extract_strided_slice %5 {offsets = [2, 0], sizes = [1, 128], strides = [1, 1]} : vector<4x128xf32> to vector<1x128xf32>
    %9 = vector.extract_strided_slice %5 {offsets = [3, 0], sizes = [1, 128], strides = [1, 1]} : vector<4x128xf32> to vector<1x128xf32>
    %cst = arith.constant dense<0.000000e+00> : vector<256x256xf32>
    %10 = tpu.matmul %1, %3, %cst {dimension_numbers = #tpu.dot_dimension_numbers<[1], [0], [0], [1], [0, 0, 1, 1], [], []>} : vector<256x128xbf16>, vector<128x256xbf16>, vector<256x256xf32> -> vector<256x256xf32>
    %11 = vector.extract_strided_slice %10 {offsets = [0, 0], sizes = [256, 128], strides = [1, 1]} : vector<256x256xf32> to vector<256x128xf32>
    %12 = arith.truncf %11 : vector<256x128xf32> to vector<256x128xbf16>
    %13 = vector.extract_strided_slice %10 {offsets = [0, 128], sizes = [256, 128], strides = [1, 1]} : vector<256x256xf32> to vector<256x128xf32>
    %cst_9 = arith.constant dense<0.000000e+00> : vector<256x128xf32>
    %14 = tpu.matmul %0, %12, %cst_9 {dimension_numbers = #tpu.dot_dimension_numbers<[1], [0], [0], [1], [0, 0, 1, 1], [], []>} : vector<256x256xbf16>, vector<256x128xbf16>, vector<256x128xf32> -> vector<256x128xf32>
    %15 = vector.broadcast %6 : vector<1x128xf32> to vector<256x128xf32>
    %16 = arith.addf %14, %15 : vector<256x128xf32>
    %cst_10 = arith.constant 0.000000e+00 : f32
    %17 = vector.broadcast %cst_10 : f32 to vector<256x128xf32>
    %18 = arith.maximumf %16, %17 : vector<256x128xf32>
    %19 = vector.broadcast %7 : vector<1x128xf32> to vector<256x128xf32>
    %20 = arith.addf %13, %19 : vector<256x128xf32>
    %cst_11 = arith.constant 0.000000e+00 : f32
    %21 = vector.broadcast %cst_11 : f32 to vector<256x128xf32>
    %22 = arith.maximumf %20, %21 : vector<256x128xf32>
    %23 = arith.addf %18, %22 : vector<256x128xf32>
    %24 = vector.broadcast %8 : vector<1x128xf32> to vector<256x128xf32>
    %25 = arith.mulf %23, %24 : vector<256x128xf32>
    %26 = vector.broadcast %9 : vector<1x128xf32> to vector<256x128xf32>
    %27 = arith.addf %25, %26 : vector<256x128xf32>
    %28 = arith.truncf %27 : vector<256x128xf32> to vector<256x128xbf16>
    %c1 = arith.constant 1 : index
    %c0_12 = arith.constant 0 : index
    %c0_13 = arith.constant 0 : index
    %29 = vector.load %arg3[%c1, %c0_12, %c0_13] : memref<2x128x256xbf16, #tpu.memory_space<vmem>>, vector<1x128x256xbf16>
    %30 = vector.shape_cast %29 : vector<1x128x256xbf16> to vector<128x256xbf16>
    %c1_14 = arith.constant 1 : index
    %c0_15 = arith.constant 0 : index
    %c0_16 = arith.constant 0 : index
    %31 = vector.load %arg4[%c1_14, %c0_15, %c0_16] : memref<2x4x128xf32, #tpu.memory_space<vmem>>, vector<1x4x128xf32>
    %32 = vector.shape_cast %31 : vector<1x4x128xf32> to vector<4x128xf32>
    %33 = vector.extract_strided_slice %32 {offsets = [0, 0], sizes = [1, 128], strides = [1, 1]} : vector<4x128xf32> to vector<1x128xf32>
    %34 = vector.extract_strided_slice %32 {offsets = [1, 0], sizes = [1, 128], strides = [1, 1]} : vector<4x128xf32> to vector<1x128xf32>
    %35 = vector.extract_strided_slice %32 {offsets = [2, 0], sizes = [1, 128], strides = [1, 1]} : vector<4x128xf32> to vector<1x128xf32>
    %36 = vector.extract_strided_slice %32 {offsets = [3, 0], sizes = [1, 128], strides = [1, 1]} : vector<4x128xf32> to vector<1x128xf32>
    %cst_17 = arith.constant dense<0.000000e+00> : vector<256x256xf32>
    %37 = tpu.matmul %28, %30, %cst_17 {dimension_numbers = #tpu.dot_dimension_numbers<[1], [0], [0], [1], [0, 0, 1, 1], [], []>} : vector<256x128xbf16>, vector<128x256xbf16>, vector<256x256xf32> -> vector<256x256xf32>
    %38 = vector.extract_strided_slice %37 {offsets = [0, 0], sizes = [256, 128], strides = [1, 1]} : vector<256x256xf32> to vector<256x128xf32>
    %39 = arith.truncf %38 : vector<256x128xf32> to vector<256x128xbf16>
    %40 = vector.extract_strided_slice %37 {offsets = [0, 128], sizes = [256, 128], strides = [1, 1]} : vector<256x256xf32> to vector<256x128xf32>
    %cst_18 = arith.constant dense<0.000000e+00> : vector<256x128xf32>
    %41 = tpu.matmul %0, %39, %cst_18 {dimension_numbers = #tpu.dot_dimension_numbers<[1], [0], [0], [1], [0, 0, 1, 1], [], []>} : vector<256x256xbf16>, vector<256x128xbf16>, vector<256x128xf32> -> vector<256x128xf32>
    %42 = vector.broadcast %33 : vector<1x128xf32> to vector<256x128xf32>
    %43 = arith.addf %41, %42 : vector<256x128xf32>
    %cst_19 = arith.constant 0.000000e+00 : f32
    %44 = vector.broadcast %cst_19 : f32 to vector<256x128xf32>
    %45 = arith.maximumf %43, %44 : vector<256x128xf32>
    %46 = vector.broadcast %34 : vector<1x128xf32> to vector<256x128xf32>
    %47 = arith.addf %40, %46 : vector<256x128xf32>
    %cst_20 = arith.constant 0.000000e+00 : f32
    %48 = vector.broadcast %cst_20 : f32 to vector<256x128xf32>
    %49 = arith.maximumf %47, %48 : vector<256x128xf32>
    %50 = arith.addf %45, %49 : vector<256x128xf32>
    %51 = vector.broadcast %35 : vector<1x128xf32> to vector<256x128xf32>
    %52 = arith.mulf %50, %51 : vector<256x128xf32>
    %53 = vector.broadcast %36 : vector<1x128xf32> to vector<256x128xf32>
    %54 = arith.addf %52, %53 : vector<256x128xf32>
    %c0_21 = arith.constant 0 : index
    %c0_22 = arith.constant 0 : index
    %55 = vector.load %arg5[%c0_21, %c0_22] : memref<256x128xf32, #tpu.memory_space<vmem>>, vector<256x128xf32>
    tpu.vector_store %arg5[%c0_21, %c0_22], %54 {strides = array<i32>} : memref<256x128xf32, #tpu.memory_space<vmem>>, vector<256x128xf32>,
    return
  }
  func.func @transform_0(%arg0: i32) -> (i32, i32) {
    %c0_i32 = arith.constant 0 : i32
    %c0_i32_0 = arith.constant 0 : i32
    return %arg0, %c0_i32 : i32, i32
  }
  func.func @transform_1(%arg0: i32) -> (i32, i32) {
    %c0_i32 = arith.constant 0 : i32
    %c0_i32_0 = arith.constant 0 : i32
    return %arg0, %c0_i32 : i32, i32
  }
  func.func @transform_2(%arg0: i32) -> (i32, i32, i32) {
    %c0_i32 = arith.constant 0 : i32
    %c0_i32_0 = arith.constant 0 : i32
    %c0_i32_1 = arith.constant 0 : i32
    %c0_i32_2 = arith.constant 0 : i32
    return %c0_i32, %c0_i32_0, %c0_i32_1 : i32, i32, i32
  }
  func.func @transform_3(%arg0: i32) -> (i32, i32, i32) {
    %c0_i32 = arith.constant 0 : i32
    %c0_i32_0 = arith.constant 0 : i32
    %c0_i32_1 = arith.constant 0 : i32
    %c0_i32_2 = arith.constant 0 : i32
    return %c0_i32, %c0_i32_0, %c0_i32_1 : i32, i32, i32
  }
  func.func @transform_4(%arg0: i32) -> (i32, i32) {
    %c0_i32 = arith.constant 0 : i32
    %c0_i32_0 = arith.constant 0 : i32
    return %arg0, %c0_i32 : i32, i32
  }
}

</mosaic_0001>

<bundles_post_ra>
// kernel: gcn_forward.1
= control target key start
LH: loop header
LB: loop body
LE: loop exit
PB: predicated region body
PF: predicated region fallthrough
CT: control target
= control target key end

     0   :  { %9 = vsyncpa [#allocation3], 0  ;;  %s3717_s0 = inlined_call_operand.vmem [shape: bf16[1024,256], index: 0, kind: input, shape index: {}]   ;;  %s3718_s1 = inlined_call_operand.vmem [shape: bf16[1024,128], index: 1, kind: input, shape index: {}]   ;;  %s3719_s2 = inlined_call_operand.vmem [shape: bf16[2,128,256], index: 2, kind: input, shape index: {}]   ;;  %s3720_s3 = inlined_call_operand.vmem [shape: f32[2,4,128], index: 3, kind: input, shape index: {}]   ;;  %s3721_s4 = inlined_call_operand.hbm [shape: f32[1024,128], index: 4, kind: output, shape index: {}]  }
   0x1   :  { %11 = vsyncpa [#allocation3 + $0x1], 0  ;;  %s2580_s15 = smov 0   ;;  %s2582_s16 = smov 0  }
   0x2   :  { %s2584_s17 = smov 0   ;;  %s2586_s18 = smov 0  }
   0x3 LB: > { %s2601_s19 = sadd.s32 4294967295, %s2551_s18   ;;  %s2014_s20 = sadd.s32 4294967294, %s2551_s18   ;;  %s2551_s18 = sphi %s2586_s18, %s3756_s18   ;;  %s2547_s17 = sphi %s2584_s17, %s3755_s17   ;;  %s2543_s16 = sphi %s2582_s16, %s3754_s16   ;;  %s2539_s15 = sphi %s2580_s15, %s3753_s15  }
   0x4   : > { %s2605_s21 = sadd.s32 1, %s2551_s18   ;;  %s118_s22 = sadd.s32 1, %s2547_s17 }
   0x5   : > { %s115_s23 = ssub.s32 %s2551_s18, %s2605_s21  ;;  %p128_p0 = scmp.ne.s32.totalorder %s2547_s17, %s2543_s16 }
   0x6   : > { %p116_p1 = scmp.eq.s32.totalorder %s115_s23, 0  ;;  %p129_p2 = scmp.eq.s32.totalorder %s2601_s19, 3 }
   0x7   : > { %p134_p3 = scmp.ne.s32.totalorder %s2543_s16, %s2539_s15  ;;  %p135_p4 = scmp.eq.s32.totalorder %s2014_s20, 3 }
   0x8   : > { %s2616_s24 = scalar_select %p116_p1, %s2547_s17, %s118_s22  }
   0x9   : > { %p2618_p5 = por %p129_p2, %p128_p0  ;;  %p2622_p6 = por %p135_p4, %p134_p3 }
   0xa   : > { %p2017_p7 = scmp.ge.s32.totalorder %s2551_s18, 1  ;;  %p178_p8 = scmp.lt.s32.totalorder %s2551_s18, 5 }
   0xc   : > { %p179_p9 = pnand %p2017_p7, %p178_p8 }
   0xe   : > { %182 = sbr.rel (%p179_p9) target bundleno = 1413 (0x585), region = 36 }
  0x13   : > { %v2146_v0 = vld [vmem:[%s3719_s2 + $0x70] sm:$0xf]  ;;  %v2430_v1 = vld [vmem:[%s3719_s2 + $0x74] sm:$0xf0]  ;;  %v2138_v2 = vld [vmem:[%s3719_s2 + $0x60] sm:$0xf] }
  0x14   : > { %v2147_v3 = vor.u32 %v2430_v1, %v2146_v0  ;;  %v2428_v4 = vld [vmem:[%s3719_s2 + $0x64] sm:$0xf0]  ;;  %v2130_v6 = vld [vmem:[%s3719_s2 + $0x50] sm:$0xf]  ;;  %v2426_v7 = vld [vmem:[%s3719_s2 + $0x54] sm:$0xf0] }
  0x15   : > { %v2139_v5 = vor.u32 %v2428_v4, %v2138_v2  ;;  %v2131_v8 = vor.u32 %v2426_v7, %v2130_v6  ;;  %v2122_v9 = vld [vmem:[%s3719_s2 + $0x40] sm:$0xf]  ;;  %v2424_v10 = vld [vmem:[%s3719_s2 + $0x44] sm:$0xf0]  ;;  %v2114_v12 = vld [vmem:[%s3719_s2 + $0x30] sm:$0xf] }
  0x16   : > { %481 = vmatpush.bf16.msra.mxu0 %v2147_v3  ;;  %v2123_v11 = vor.u32 %v2424_v10, %v2122_v9  ;;  %v2422_v13 = vld [vmem:[%s3719_s2 + $0x34] sm:$0xf0]  ;;  %s2019_s30 = sshll.u32 %s2601_s19, 5  ;;  %v2106_v15 = vld [vmem:[%s3719_s2 + $0x20] sm:$0xf]  ;;  %s207_s11 = sand.u32 1, %s2543_s16  }
  0x17   : > { %v2115_v14 = vor.u32 %v2422_v13, %v2114_v12  ;;  %v2420_v16 = vld [vmem:[%s3719_s2 + $0x24] sm:$0xf0]  ;;  %p211_p10 = scmp.lt.s32.totalorder %s2019_s30, 127  ;;  %v2098_v18 = vld [vmem:[%s3719_s2 + $0x10] sm:$0xf]  ;;  %s2018_s12 = sshll.u32 %s207_s11, 8 }
  0x18   : > { %v2107_v17 = vor.u32 %v2420_v16, %v2106_v15  ;;  %v2418_v19 = vld [vmem:[%s3719_s2 + $0x14] sm:$0xf0]  ;;  %v2090_v21 = vld [vmem:[%s3719_s2] sm:$0xf]  ;;  %v2416_v22 = vld [vmem:[%s3719_s2 + $0x4] sm:$0xf0] }
  0x19   : > { %s3758_s30 = smov (!%p211_p10, %s2019_s30), 127  ;;  %v2099_v20 = vor.u32 %v2418_v19, %v2098_v18  ;;  %v2091_v23 = vor.u32 %v2416_v22, %v2090_v21  ;;  %v2429_v59 = vld [vmem:[%s3719_s2 + $0x74] sm:$0xf]  ;;  %v2148_v60 = vld [vmem:[%s3719_s2 + $0x78] sm:$0xf0]  ;;  %s3493_s13 = scalar_lea.vmem [#allocation2], %s2018_s12 }
  0x1a   : > { %482 = vmatpush.bf16.msra.mxu0 %v2139_v5  ;;  %s2023_s23 = sshll.u32 %s3758_s30, 2  ;;  %v2151_v61 = vor.u32 %v2429_v59, %v2148_v60  ;;  %v2427_v62 = vld [vmem:[%s3719_s2 + $0x64] sm:$0xf]  ;;  %v2140_v63 = vld [vmem:[%s3719_s2 + $0x68] sm:$0xf0]  ;;  %s2366_s5 = sshll.u32 %s3758_s30, 3 }
  0x1b   : > { %s2683_s29 = scalar_lea.vmem %s3718_s1, %s2023_s23  ;;  %v2143_v0 = vor.u32 %v2427_v62, %v2140_v63  ;;  %v2425_v2 = vld [vmem:[%s3719_s2 + $0x54] sm:$0xf]  ;;  %v2132_v3 = vld [vmem:[%s3719_s2 + $0x58] sm:$0xf0]  ;;  %v2423_v4 = vld [vmem:[%s3719_s2 + $0x44] sm:$0xf]  ;;  %s2838_s8 = scalar_lea.vmem %s3717_s0, %s2366_s5 }
  0x1c   : > { %v2686_v24 = vld [vmem:[%s2683_s29] sm:$0xff]  ;;  %v2690_v25 = vld [vmem:[%s2683_s29 + $0x8] sm:$0xff]  ;;  %v2694_v26 = vld [vmem:[%s2683_s29 + $0x10] sm:$0xff]  ;;  %570 = vmatpush.bf16.msra.mxu1 %v2151_v61  ;;  %v2135_v6 = vor.u32 %v2425_v2, %v2132_v3  ;;  %s2447_s14 = sshll.u32 %s2601_s19, 8  ;;  %s1937_s27 = sshll.u32 %s3493_s13, 4  ;;  %s1938_s27 = int_to_ptr.vmem [resolvable:$true] %s1937_s27 }
  0x1d   : > { %v2698_v27 = vld [vmem:[%s2683_s29 + $0x18] sm:$0xff]  ;;  %v2702_v28 = vld [vmem:[%s2683_s29 + $0x20] sm:$0xff]  ;;  %v2706_v29 = vld [vmem:[%s2683_s29 + $0x28] sm:$0xff]  ;;  %s1936_s23 = scalar_lea.hbm %s3721_s4, %s2447_s14  ;;  %s1925_s19 = scalar_lea.sflag [#allocation3], %s207_s11 }
  0x1e   : > { %483 = vmatpush.bf16.msra.mxu0 %v2131_v8  ;;  %v2710_v30 = vld [vmem:[%s2683_s29 + $0x30] sm:$0xff]  ;;  %v2714_v31 = vld [vmem:[%s2683_s29 + $0x38] sm:$0xff]  ;;  %v2718_v32 = vld [vmem:[%s2683_s29 + $0x40] sm:$0xff]  ;;  %s1939_s28 = sshll.u32 %s1936_s23, 4  ;;  %s2509_s30 = scalar_lea.hbm %s3721_s4, 1024  ;;  %s1940_s28 = int_to_ptr.hbm [resolvable:$true] %s1939_s28 }
  0x1f   : > { %v2728_v36 = vld [vmem:[%s2683_s29 + $0x48] sm:$0xff]  ;;  %v2738_v40 = vld [vmem:[%s2683_s29 + $0x50] sm:$0xff]  ;;  %v2748_v44 = vld [vmem:[%s2683_s29 + $0x58] sm:$0xff] }
  0x20   : > { %v2752_v48 = vld [vmem:[%s2683_s29 + $0x60] sm:$0xff]  ;;  %v2756_v51 = vld [vmem:[%s2683_s29 + $0x68] sm:$0xff]  ;;  %v2760_v54 = vld [vmem:[%s2683_s29 + $0x70] sm:$0xff]  ;;  %571 = vmatpush.bf16.msra.mxu1 %v2143_v0 }
  0x21   : > { %v2764_v57 = vld [vmem:[%s2683_s29 + $0x78] sm:$0xff]  ;;  %v2124_v7 = vld [vmem:[%s3719_s2 + $0x48] sm:$0xf0]  ;;  %v2419_v13 = vld [vmem:[%s3719_s2 + $0x24] sm:$0xf]  ;;  %s2503_s29 = sshra.s32 %s1940_s28, 4  ;;  %s2504_s29 = int_to_ptr.hbm [resolvable:$true] %s2503_s29 }
  0x22   : > { %484 = vmatpush.bf16.msra.mxu0 %v2123_v11  ;;  %v2127_v8 = vor.u32 %v2423_v4, %v2124_v7  ;;  %v2421_v11 = vld [vmem:[%s3719_s2 + $0x34] sm:$0xf]  ;;  %v2116_v12 = vld [vmem:[%s3719_s2 + $0x38] sm:$0xf0]  ;;  %v2108_v16 = vld [vmem:[%s3719_s2 + $0x28] sm:$0xf0]  ;;  %p2510_p0 = scmp.lt.s32.totalorder %s2504_s29, %s3721_s4 }
  0x23   : > { %v2119_v15 = vor.u32 %v2421_v11, %v2116_v12  ;;  %v2100_v21 = vld [vmem:[%s3719_s2 + $0x18] sm:$0xf0]  ;;  %v2415_v22 = vld [vmem:[%s3719_s2 + $0x4] sm:$0xf]  ;;  %v2170_v60 = vld [vmem:[%s2838_s8 + $0x20] sm:$0xf] }
  0x24   : > { %572 = vmatpush.bf16.msra.mxu1 %v2135_v6  ;;  %v2372_v61 = vld [vmem:[%s2838_s8 + $0x24] sm:$0xf0]  ;;  %v2178_v4 = vld [vmem:[%s2838_s8 + $0x30] sm:$0xf]  ;;  %v2369_v7 = vld [vmem:[%s2838_s8 + $0x14] sm:$0xf] }
  0x25   : > { %v2854_v62 = vor.u32 %v2372_v61, %v2170_v60  ;;  %v2186_v11 = vld [vmem:[%s2838_s8 + $0x40] sm:$0xf]  ;;  %v2376_v12 = vld [vmem:[%s2838_s8 + $0x44] sm:$0xf0]  ;;  %v2349_v60 = vld [vmem:[%s3719_s2 + $0xe8] sm:$0xf0] }
  0x26   : > { %485 = vmatpush.bf16.msra.mxu0 %v2115_v14  ;;  %s2505_s5 = scalar_lea.hbm %s2504_s29, 256 }
  0x27   : > { %p2506_p11 = scmp.ne.s32.totalorder %s2504_s29, %s2505_s5  ;;  %p2511_p1 = scmp.lt.s32.totalorder %s2509_s30, %s2505_s5 }
  0x28   : > { %573 = vmatpush.bf16.msra.mxu1 %v2127_v8  ;;  %v2164_v8 = vld [vmem:[%s2838_s8 + $0x18] sm:$0xf0] }
  0x29   : > { %p2507_p12 = pnand %p2506_p11, %p2618_p5  ;;  %p2512_p2 = por %p2511_p1, %p2510_p0 }
  0x2a   : > { %486 = vmatpush.bf16.msra.mxu0 %v2107_v17  ;;  %v2111_v17 = vor.u32 %v2419_v13, %v2108_v16  ;;  %v2882_v13 = vor.u32 %v2376_v12, %v2186_v11  ;;  %v2341_v11 = vld [vmem:[%s3719_s2 + $0xd8] sm:$0xf0] }
  0x2b   : > { %p2508_p13 = pneg %p2507_p12 }
  0x2c   : > { %574 = vmatpush.bf16.msra.mxu1 %v2119_v15  ;;  %v2172_v15 = vld [vmem:[%s2838_s8 + $0x28] sm:$0xf0] }
  0x2d   : > { %p2513_p3 = pnand %p2512_p2, %p2508_p13 }
  0x2e   : > { %487 = vmatpush.bf16.msra.mxu0 %v2099_v20  ;;  %v2417_v20 = vld [vmem:[%s3719_s2 + $0x14] sm:$0xf] }
  0x30   : > { %575 = vmatpush.bf16.msra.mxu1 %v2111_v17 }
  0x32   : > { %488 = vmatpush.bf16.msra.mxu0 %v2091_v23  ;;  %v2103_v23 = vor.u32 %v2417_v20, %v2100_v21  ;;  %v2180_v21 = vld [vmem:[%s2838_s8 + $0x38] sm:$0xf0] }
  0x34   : > { %576 = vmatpush.bf16.msra.mxu1 %v2103_v23 }
  0x35   : > { %489 = vmatmul.bf16.vlgmr.msra.gmra.mxu0 %v2686_v24 }
  0x45   : > { %494 = vmatmul.bf16.gmra.mxu0 %v2690_v25 }
  0x55   : > { %499 = vmatmul.bf16.gmra.mxu0 %v2694_v26 }
  0x65   : > { %504 = vmatmul.bf16.gmra.mxu0 %v2698_v27 }
  0x75   : > { %509 = vmatmul.bf16.gmra.mxu0 %v2702_v28 }
  0x85   : > { %514 = vmatmul.bf16.gmra.mxu0 %v2706_v29 }
  0x95   : > { %519 = vmatmul.bf16.gmra.mxu0 %v2710_v30 }
  0xa5   : > { %524 = vmatmul.bf16.gmra.mxu0 %v2714_v31 }
  0xb2   : > { %v2720_v33 = vpop.f32.mrf.mxu0 }
  0xb5   : > { %529 = vmatmul.bf16.gmra.mxu0 %v2718_v32 }
  0xba   : > { %v2723_v34 = vpop.f32.mrf.mxu0 }
  0xbb   : > { %v659_v35 = vpack.c.bf16 %v2723_v34, %v2720_v33 }
  0xc2   : > { %v2730_v37 = vpop.f32.mrf.mxu0 }
  0xc5   : > { %534 = vmatmul.bf16.gmra.mxu0 %v2728_v36 }
  0xca   : > { %v2733_v38 = vpop.f32.mrf.mxu0 }
  0xcb   : > { %v660_v39 = vpack.c.bf16 %v2733_v38, %v2730_v37 }
  0xd2   : > { %v2740_v41 = vpop.f32.mrf.mxu0 }
  0xd5   : > { %539 = vmatmul.bf16.gmra.mxu0 %v2738_v40 }
  0xda   : > { %v2743_v42 = vpop.f32.mrf.mxu0 }
  0xdb   : > { %v661_v43 = vpack.c.bf16 %v2743_v42, %v2740_v41 }
  0xe2   : > { %v505_v45 = vpop.f32.mrf.mxu0 }
  0xe5   : > { %544 = vmatmul.bf16.gmra.mxu0 %v2748_v44 }
  0xea   : > { %v507_v46 = vpop.f32.mrf.mxu0 }
  0xeb   : > { %v662_v47 = vpack.c.bf16 %v507_v46, %v505_v45  ;;  %v2092_v45 = vld [vmem:[%s3719_s2 + $0x8] sm:$0xf0] }
  0xec   : > { %v2095_v46 = vor.u32 %v2415_v22, %v2092_v45  ;;  %v2202_v45 = vld [vmem:[%s2838_s8 + $0x60] sm:$0xf] }
  0xee   : > { %577 = vmatpush.bf16.msra.mxu1 %v2095_v46  ;;  %v2380_v46 = vld [vmem:[%s2838_s8 + $0x64] sm:$0xf0] }
  0xf1   : > { %578 = vmatmul.bf16.vlgmr.msra.gmra.mxu1 %v2686_v24 }
  0xf2   : > { %v510_v49 = vpop.f32.mrf.mxu0 }
  0xf5   : > { %549 = vmatmul.bf16.gmra.mxu0 %v2752_v48 }
  0xfa   : > { %v512_v50 = vpop.f32.mrf.mxu0 }
  0xfb   : > { %v663_v18 = vpack.c.bf16 %v512_v50, %v510_v49 }
 0x101   : > { %583 = vmatmul.bf16.gmra.mxu1 %v2690_v25  ;;  %v2154_v25 = vld [vmem:[%s2838_s8] sm:$0xf] }
 0x102   : > { %v515_v52 = vpop.f32.mrf.mxu0 }
 0x105   : > { %554 = vmatmul.bf16.gmra.mxu0 %v2756_v51 }
 0x10a   : > { %v517_v53 = vpop.f32.mrf.mxu0 }
 0x10b   : > { %v664_v14 = vpack.c.bf16 %v517_v53, %v515_v52  ;;  %v2370_v53 = vld [vmem:[%s2838_s8 + $0x14] sm:$0xf0] }
 0x111   : > { %588 = vmatmul.bf16.gmra.mxu1 %v2694_v26  ;;  %v2368_v26 = vld [vmem:[%s2838_s8 + $0x4] sm:$0xf0] }
 0x112   : > { %v520_v55 = vpop.f32.mrf.mxu0 }
 0x115   : > { %559 = vmatmul.bf16.gmra.mxu0 %v2760_v54 }
 0x11a   : > { %v522_v56 = vpop.f32.mrf.mxu0 }
 0x11b   : > { %v665_v9 = vpack.c.bf16 %v522_v56, %v520_v55 }
 0x121   : > { %593 = vmatmul.bf16.gmra.mxu1 %v2698_v27  ;;  %v2842_v27 = vor.u32 %v2368_v26, %v2154_v25  ;;  %v2384_v25 = vld [vmem:[%s2838_s8 + $0x84] sm:$0xf0]  ;;  %v2355_v26 = vld [vmem:[%s3719_s2 + $0xf0] sm:$0xf] }
 0x122   : > { %v525_v58 = vpop.f32.mrf.mxu0 }
 0x125   : > { %564 = vmatmul.bf16.gmra.mxu0 %v2764_v57 }
 0x12a   : > { %v527_v1 = vpop.f32.mrf.mxu0 }
 0x12b   : > { %v666_v5 = vpack.c.bf16 %v527_v1, %v525_v58  ;;  %v2156_v1 = vld [vmem:[%s2838_s8 + $0x8] sm:$0xf0] }
 0x12d   : > { %836 = vmatpush.bf16.msra.mxu2 %v666_v5  ;;  %v2374_v5 = vld [vmem:[%s2838_s8 + $0x34] sm:$0xf0] }
 0x131   : > { %837 = vmatpush.bf16.msra.mxu2 %v665_v9  ;;  %598 = vmatmul.bf16.gmra.mxu1 %v2702_v28  ;;  %v2875_v9 = vor.u32 %v2369_v7, %v2164_v8  ;;  %v2441_v7 = vld [vmem:[%s3719_s2 + $0xd4] sm:$0xf] }
 0x132   : > { %v2791_v10 = vpop.f32.mrf.mxu0  ;;  %v2344_v12 = vor.u32 %v2441_v7, %v2341_v11  ;;  %v2299_v11 = vld [vmem:[%s3719_s2 + $0x80] sm:$0xf] }
 0x135   : > { %838 = vmatpush.bf16.msra.mxu2 %v664_v14 }
 0x139   : > { %839 = vmatpush.bf16.msra.mxu2 %v663_v18  ;;  %v2194_v18 = vld [vmem:[%s2838_s8 + $0x50] sm:$0xf] }
 0x13a   : > { %v2805_v19 = vpop.f32.mrf.mxu0 }
 0x13b   : > { %v667_v2 = vpack.c.bf16 %v2805_v19, %v2791_v10  ;;  %v2378_v19 = vld [vmem:[%s2838_s8 + $0x54] sm:$0xf0] }
 0x13c   : > { %v2897_v20 = vor.u32 %v2378_v19, %v2194_v18  ;;  %v2440_v18 = vld [vmem:[%s3719_s2 + $0xc4] sm:$0xf0]  ;;  %v2439_v19 = vld [vmem:[%s3719_s2 + $0xc4] sm:$0xf] }
 0x13d   : > { %840 = vmatpush.bf16.msra.mxu2 %v662_v47 }
 0x141   : > { %841 = vmatpush.bf16.msra.mxu2 %v661_v43  ;;  %603 = vmatmul.bf16.gmra.mxu1 %v2706_v29 }
 0x142   : > { %v535_v49 = vpop.f32.mrf.mxu0 }
 0x145   : > { %842 = vmatpush.bf16.msra.mxu2 %v660_v39  ;;  %v2162_v39 = vld [vmem:[%s2838_s8 + $0x10] sm:$0xf] }
 0x146   : > { %v2848_v55 = vor.u32 %v2370_v53, %v2162_v39  ;;  %v2357_v53 = vld [vmem:[%s3719_s2 + $0xf8] sm:$0xf0] }
 0x149   : > { %843 = vmatpush.bf16.msra.mxu2 %v659_v35 }
 0x14a   : > { %v537_v47 = vpop.f32.mrf.mxu0 }
 0x14b   : > { %v668_v0 = vpack.c.bf16 %v537_v47, %v535_v49  ;;  %v2910_v49 = vor.u32 %v2380_v46, %v2202_v45  ;;  %v2226_v45 = vld [vmem:[%s2838_s8 + $0x90] sm:$0xf]  ;;  %v2386_v46 = vld [vmem:[%s2838_s8 + $0x94] sm:$0xf0] }
 0x14c   : > { %844 = vmatmul.bf16.vlgmr.msra.gmra.mxu2 %v2842_v27 }
 0x151   : > { %608 = vmatmul.bf16.gmra.mxu1 %v2710_v30 }
 0x152   : > { %v540_v50 = vpop.f32.mrf.mxu0 }
 0x15a   : > { %v542_v52 = vpop.f32.mrf.mxu0 }
 0x15b   : > { %v669_v63 = vpack.c.bf16 %v542_v52, %v540_v50  ;;  %v2188_v50 = vld [vmem:[%s2838_s8 + $0x48] sm:$0xf0] }
 0x15c   : > { %849 = vmatmul.bf16.gmra.mxu2 %v2848_v55 }
 0x161   : > { %613 = vmatmul.bf16.gmra.mxu1 %v2714_v31  ;;  %v2367_v31 = vld [vmem:[%s2838_s8 + $0x4] sm:$0xf] }
 0x162   : > { %v545_v41 = vpop.f32.mrf.mxu0  ;;  %v2862_v3 = vor.u32 %v2367_v31, %v2156_v1  ;;  %v2204_v31 = vld [vmem:[%s2838_s8 + $0x68] sm:$0xf0] }
 0x16a   : > { %v547_v42 = vpop.f32.mrf.mxu0 }
 0x16b   : > { %v670_v59 = vpack.c.bf16 %v547_v42, %v545_v41  ;;  %v2210_v42 = vld [vmem:[%s2838_s8 + $0x70] sm:$0xf] }
 0x16c   : > { %854 = vmatmul.bf16.gmra.mxu2 %v2854_v62 }
 0x16e   : > { %v2867_v6 = vpop.f32.mrf.mxu1 }
 0x171   : > { %618 = vmatmul.bf16.gmra.mxu1 %v2718_v32  ;;  %v2869_v32 = vor.u32 %v2374_v5, %v2178_v4  ;;  %v2339_v5 = vld [vmem:[%s3719_s2 + $0xd0] sm:$0xf] }
 0x172   : > { %v550_v43 = vpop.f32.mrf.mxu0 }
 0x176   : > { %v2877_v10 = vpop.f32.mrf.mxu1 }
 0x17a   : > { %v552_v24 = vpop.f32.mrf.mxu0 }
 0x17b   : > { %v671_v30 = vpack.c.bf16 %v552_v24, %v550_v43  ;;  %v2382_v43 = vld [vmem:[%s2838_s8 + $0x74] sm:$0xf0] }
 0x17c   : > { %859 = vmatmul.bf16.gmra.mxu2 %v2869_v32  ;;  %v2925_v24 = vor.u32 %v2382_v43, %v2210_v42  ;;  %v2323_v43 = vld [vmem:[%s3719_s2 + $0xb0] sm:$0xf] }
 0x17e   : > { %v2884_v14 = vpop.f32.mrf.mxu1 }
 0x181   : > { %623 = vmatmul.bf16.gmra.mxu1 %v2728_v36  ;;  %v2371_v36 = vld [vmem:[%s2838_s8 + $0x24] sm:$0xf] }
 0x182   : > { %v555_v37 = vpop.f32.mrf.mxu0  ;;  %v2890_v16 = vor.u32 %v2371_v36, %v2172_v15  ;;  %v2331_v15 = vld [vmem:[%s3719_s2 + $0xc0] sm:$0xf] }
 0x186   : > { %v2893_v17 = vpop.f32.mrf.mxu1 }
 0x18a   : > { %v557_v38 = vpop.f32.mrf.mxu0 }
 0x18b   : > { %v672_v58 = vpack.c.bf16 %v557_v38, %v555_v37  ;;  %v2196_v38 = vld [vmem:[%s2838_s8 + $0x58] sm:$0xf0] }
 0x18c   : > { %864 = vmatmul.bf16.gmra.mxu2 %v2882_v13 }
 0x18e   : > { %v2903_v22 = vpop.f32.mrf.mxu1 }
 0x191   : > { %628 = vmatmul.bf16.gmra.mxu1 %v2738_v40  ;;  %v2373_v40 = vld [vmem:[%s2838_s8 + $0x34] sm:$0xf] }
 0x192   : > { %v560_v33 = vpop.f32.mrf.mxu0  ;;  %v2905_v23 = vor.u32 %v2373_v40, %v2180_v21  ;;  %v2332_v40 = vor.u32 %v2440_v18, %v2331_v15  ;;  %v2333_v21 = vld [vmem:[%s3719_s2 + $0xc8] sm:$0xf0]  ;;  %v2431_v15 = vld [vmem:[%s3719_s2 + $0x84] sm:$0xf] }
 0x196   : > { %v2912_v47 = vpop.f32.mrf.mxu1 }
 0x19a   : > { %v562_v34 = vpop.f32.mrf.mxu0 }
 0x19b   : > { %v673_v56 = vpack.c.bf16 %v562_v34, %v560_v33  ;;  %v2218_v34 = vld [vmem:[%s2838_s8 + $0x80] sm:$0xf] }
 0x19c   : > { %869 = vmatmul.bf16.gmra.mxu2 %v2897_v20 }
 0x19e   : > { %v2920_v41 = vpop.f32.mrf.mxu1 }
 0x1a1   : > { %633 = vmatmul.bf16.gmra.mxu1 %v2748_v44  ;;  %v2375_v44 = vld [vmem:[%s2838_s8 + $0x44] sm:$0xf] }
 0x1a2   : > { %v565_v28 = vpop.f32.mrf.mxu0  ;;  %v2918_v52 = vor.u32 %v2375_v44, %v2188_v50  ;;  %v2336_v44 = vor.u32 %v2439_v19, %v2333_v21  ;;  %v3005_v50 = vor.u32 %v2386_v46, %v2226_v45  ;;  %v2301_v19 = vld [vmem:[%s3719_s2 + $0x88] sm:$0xf0]  ;;  %v2388_v21 = vld [vmem:[%s2838_s8 + $0xa4] sm:$0xf0] }
 0x1a3   : > { %v2304_v45 = vor.u32 %v2431_v15, %v2301_v19 }
 0x1a6   : > { %v2928_v37 = vpop.f32.mrf.mxu1 }
 0x1aa   : > { %v567_v29 = vpop.f32.mrf.mxu0 }
 0x1ab   : > { %v674_v35 = vpack.c.bf16 %v567_v29, %v565_v28  ;;  %v2446_v28 = vld [vmem:[%s3719_s2 + $0xf4] sm:$0xf0] }
 0x1ac   : > { %874 = vmatmul.bf16.gmra.mxu2 %v2910_v49  ;;  %v2356_v39 = vor.u32 %v2446_v28, %v2355_v26  ;;  %v2381_v28 = vld [vmem:[%s2838_s8 + $0x74] sm:$0xf] }
 0x1ad   : > { %925 = vmatpush.bf16.msra.mxu3 %v674_v35  ;;  %v2949_v35 = vor.u32 %v2384_v25, %v2218_v34  ;;  %v2325_v25 = vld [vmem:[%s3719_s2 + $0xb8] sm:$0xf0] }
 0x1ae   : > { %v2947_v29 = vpop.f32.mrf.mxu1  ;;  %1324 = vmatpush.bf16.msrb.mxu0 %v2356_v39 }
 0x1b1   : > { %926 = vmatpush.bf16.msra.mxu3 %v673_v56  ;;  %638 = vmatmul.bf16.gmra.mxu1 %v2752_v48  ;;  %v2377_v48 = vld [vmem:[%s2838_s8 + $0x54] sm:$0xf]  ;;  %v2347_v56 = vld [vmem:[%s3719_s2 + $0xe0] sm:$0xf] }
 0x1b2   : > { %v2933_v33 = vor.u32 %v2377_v48, %v2196_v38  ;;  %v2438_v48 = vld [vmem:[%s3719_s2 + $0xb4] sm:$0xf0]  ;;  %v2437_v38 = vld [vmem:[%s3719_s2 + $0xb4] sm:$0xf] }
 0x1b3   : > { %v2324_v34 = vor.u32 %v2438_v48, %v2323_v43  ;;  %v2328_v26 = vor.u32 %v2437_v38, %v2325_v25  ;;  %v2383_v43 = vld [vmem:[%s2838_s8 + $0x84] sm:$0xf]  ;;  %v2220_v48 = vld [vmem:[%s2838_s8 + $0x88] sm:$0xf0] }
 0x1b5   : > { %927 = vmatpush.bf16.msra.mxu3 %v672_v58  ;;  %v2444_v58 = vld [vmem:[%s3719_s2 + $0xe4] sm:$0xf0] }
 0x1b6   : > { %v2348_v61 = vor.u32 %v2444_v58, %v2347_v56  ;;  %v2436_v56 = vld [vmem:[%s3719_s2 + $0xa4] sm:$0xf0] }
 0x1b8   : > { %1325 = vmatpush.bf16.msrb.mxu0 %v2348_v61  ;;  %v2307_v61 = vld [vmem:[%s3719_s2 + $0x90] sm:$0xf] }
 0x1b9   : > { %928 = vmatpush.bf16.msra.mxu3 %v671_v30 }
 0x1bc   : > { %879 = vmatmul.bf16.gmra.mxu2 %v2925_v24 }
 0x1bd   : > { %929 = vmatpush.bf16.msra.mxu3 %v670_v59  ;;  %v2443_v59 = vld [vmem:[%s3719_s2 + $0xe4] sm:$0xf] }
 0x1c1   : > { %930 = vmatpush.bf16.msra.mxu3 %v669_v63  ;;  %643 = vmatmul.bf16.gmra.mxu1 %v2756_v51  ;;  %v2445_v51 = vld [vmem:[%s3719_s2 + $0xf4] sm:$0xf]  ;;  %v2352_v63 = vor.u32 %v2443_v59, %v2349_v60 }
 0x1c2   : > { %v2360_v30 = vor.u32 %v2445_v51, %v2357_v53  ;;  %v2212_v51 = vld [vmem:[%s2838_s8 + $0x78] sm:$0xf0]  ;;  %v2315_v53 = vld [vmem:[%s3719_s2 + $0xa0] sm:$0xf] }
 0x1c3   : > { %v2316_v58 = vor.u32 %v2436_v56, %v2315_v53  ;;  %v3039_v59 = vor.u32 %v2381_v28, %v2212_v51 }
 0x1c4   : > { %1413 = vmatpush.bf16.msrb.mxu1 %v2360_v30  ;;  %v2317_v30 = vld [vmem:[%s3719_s2 + $0xa8] sm:$0xf0] }
 0x1c5   : > { %931 = vmatpush.bf16.msra.mxu3 %v668_v0  ;;  %v2379_v0 = vld [vmem:[%s2838_s8 + $0x64] sm:$0xf] }
 0x1c6   : > { %v2974_v4 = vor.u32 %v2379_v0, %v2204_v31  ;;  %v2433_v31 = vld [vmem:[%s3719_s2 + $0x94] sm:$0xf] }
 0x1c8   : > { %1414 = vmatpush.bf16.msrb.mxu1 %v2352_v63  ;;  %v2434_v63 = vld [vmem:[%s3719_s2 + $0x94] sm:$0xf0] }
 0x1c9   : > { %932 = vmatpush.bf16.msra.mxu3 %v667_v2  ;;  %v2972_v2 = vpop.f32.mrf.mxu1  ;;  %v2308_v0 = vor.u32 %v2434_v63, %v2307_v61 }
 0x1cc   : > { %933 = vmatmul.bf16.vlgmr.msra.gmra.mxu3 %v2862_v3  ;;  %884 = vmatmul.bf16.gmra.mxu2 %v2949_v35 }
 0x1cd   : > { %1415 = vmatpush.bf16.msrb.mxu1 %v2344_v12  ;;  %v2432_v12 = vld [vmem:[%s3719_s2 + $0x84] sm:$0xf0] }
 0x1ce   : > { %v2300_v18 = vor.u32 %v2432_v12, %v2299_v11 }
 0x1cf   : > { %v2970_v1 = vpop.f32.mrf.mxu2 }
 0x1d1   : > { %648 = vmatmul.bf16.gmra.mxu1 %v2760_v54  ;;  %v2442_v54 = vld [vmem:[%s3719_s2 + $0xd4] sm:$0xf0]  ;;  %v3007_v42 = vpop.f32.mrf.mxu1 }
 0x1d2   : > { %v2340_v8 = vor.u32 %v2442_v54, %v2339_v5  ;;  %1416 = vmatpush.bf16.msrb.mxu1 %v2336_v44  ;;  %v2309_v5 = vld [vmem:[%s3719_s2 + $0x98] sm:$0xf0]  ;;  %v304_v44 = vld [vmem:[%s3720_s3] sm:$0xf] }
 0x1d3   : > { %v2312_v7 = vor.u32 %v2433_v31, %v2309_v5  ;;  %v3084_v25 = vperm.slane %v304_v44, 0  ;;  %v3088_v28 = vperm.slane %v304_v44, 1  ;;  %v2228_v5 = vld [vmem:[%s2838_s8 + $0x98] sm:$0xf0] }
 0x1d4   : > { %1326 = vmatpush.bf16.msrb.mxu0 %v2340_v8 }
 0x1d5   : > { %v846_v51 = vadd.f32 %v2970_v1, %v3084_v25  ;;  %v2385_v1 = vld [vmem:[%s2838_s8 + $0x94] sm:$0xf]  ;;  %v1048_v11 = vadd.f32 %v3088_v28, %v2877_v10 }
 0x1d6   : > { %1417 = vmatpush.bf16.msrb.mxu1 %v2328_v26  ;;  %v3086_v26 = vor.u32 %v2383_v43, %v2220_v48 }
 0x1d7   : > { %v2989_v36 = vpop.f32.mrf.mxu2 }
 0x1d8   : > { %1327 = vmatpush.bf16.msrb.mxu0 %v2332_v40  ;;  %v2234_v40 = vld [vmem:[%s2838_s8 + $0xa0] sm:$0xf]  ;;  %v848_v12 = vadd.f32 %v2989_v36, %v3084_v25 }
 0x1d9   : > { %v3053_v54 = vpop.f32.mrf.mxu1  ;;  %v3072_v46 = vor.u32 %v2388_v21, %v2234_v40  ;;  %v3114_v40 = vor.u32 %v2385_v1, %v2228_v5  ;;  %v1080_v21 = vmax.f32 %v1048_v11, 0.0 }
 0x1dc   : > { %938 = vmatmul.bf16.gmra.mxu3 %v2875_v9  ;;  %889 = vmatmul.bf16.gmra.mxu2 %v3005_v50 }
 0x1dd   : > { %1328 = vmatpush.bf16.msrb.mxu0 %v2324_v34 }
 0x1df   : > { %v3025_v39 = vpop.f32.mrf.mxu2 }
 0x1e0   : > { %v851_v10 = vadd.f32 %v3025_v39, %v3084_v25 }
 0x1e1   : > { %653 = vmatmul.bf16.gmra.mxu1 %v2764_v57  ;;  %v2435_v57 = vld [vmem:[%s3719_s2 + $0xa4] sm:$0xf]  ;;  %1329 = vmatpush.bf16.msrb.mxu0 %v2316_v58  ;;  %v3082_v34 = vpop.f32.mrf.mxu1  ;;  %v2242_v58 = vld [vmem:[%s2838_s8 + $0xb0] sm:$0xf] }
 0x1e2   : > { %v2320_v60 = vor.u32 %v2435_v57, %v2317_v30  ;;  %v2390_v57 = vld [vmem:[%s2838_s8 + $0xb4] sm:$0xf0]  ;;  %v1047_v30 = vadd.f32 %v3088_v28, %v2867_v6 }
 0x1e3   : > { %v3101_v63 = vor.u32 %v2390_v57, %v2242_v58  ;;  %v1049_v57 = vadd.f32 %v3088_v28, %v2884_v14  ;;  %v2387_v14 = vld [vmem:[%s2838_s8 + $0xa4] sm:$0xf] }
 0x1e4   : > { %1418 = vmatpush.bf16.msrb.mxu1 %v2320_v60 }
 0x1e5   : > { %1330 = vmatpush.bf16.msrb.mxu0 %v2308_v0  ;;  %v1079_v0 = vmax.f32 %v1047_v30, 0.0  ;;  %v1081_v11 = vmax.f32 %v1049_v57, 0.0 }
 0x1e7   : > { %v3056_v8 = vpop.f32.mrf.mxu2 }
 0x1e8   : > { %1419 = vmatpush.bf16.msrb.mxu1 %v2312_v7 }
 0x1e9   : > { %1331 = vmatpush.bf16.msrb.mxu0 %v2300_v18  ;;  %v3099_v60 = vpop.f32.mrf.mxu1  ;;  %v3112_v18 = vperm.slane %v304_v44, 2 }
 0x1ec   : > { %943 = vmatmul.bf16.gmra.mxu3 %v2890_v16  ;;  %1420 = vmatpush.bf16.msrb.mxu1 %v2304_v45 }
 0x1ed   : > { %894 = vmatmul.bf16.gmra.mxu2 %v3072_v46 }
 0x1ef   : > { %v3080_v38 = vpop.f32.mrf.mxu2 }
 0x1f1   : > { %v3116_v45 = vpop.f32.mrf.mxu1 }
 0x1f7   : > { %v3093_v53 = vpop.f32.mrf.mxu2 }
 0x1fc   : > { %948 = vmatmul.bf16.gmra.mxu3 %v2905_v23 }
 0x1fd   : > { %899 = vmatmul.bf16.gmra.mxu2 %v3101_v63 }
 0x1ff   : > { %v3106_v7 = vpop.f32.mrf.mxu2 }
 0x20c   : > { %953 = vmatmul.bf16.gmra.mxu3 %v2918_v52 }
 0x21c   : > { %958 = vmatmul.bf16.gmra.mxu3 %v2933_v33 }
 0x22c   : > { %963 = vmatmul.bf16.gmra.mxu3 %v2974_v4 }
 0x23c   : > { %968 = vmatmul.bf16.gmra.mxu3 %v3039_v59 }
 0x24c   : > { %973 = vmatmul.bf16.gmra.mxu3 %v3086_v26 }
 0x24f   : > { %v934_v56 = vpop.f32.mrf.mxu3 }
 0x250   : > { %v935_v61 = vadd.f32 %v934_v56, %v846_v51  ;;  %v3119_v51 = vperm.slane %v304_v44, 3  ;;  %v3124_v56 = vpop.f32.mrf.mxu2 }
 0x252   : > { %v1014_v31 = vmax.f32 %v935_v61, 0.0  ;;  %v2250_v61 = vld [vmem:[%s2838_s8 + $0xc0] sm:$0xf] }
 0x254   : > { %v1111_v15 = vadd.f32 %v1079_v0, %v1014_v31  ;;  %v2392_v0 = vld [vmem:[%s2838_s8 + $0xc4] sm:$0xf0] }
 0x255   : > { %v3133_v1 = vor.u32 %v2392_v0, %v2250_v61  ;;  %v856_v0 = vadd.f32 %v3080_v38, %v3084_v25 }
 0x256   : > { %v1144_v48 = vmul.f32 %v3112_v18, %v1111_v15  ;;  %v2236_v15 = vld [vmem:[%s2838_s8 + $0xa8] sm:$0xf0] }
 0x257   : > { %v936_v6 = vpop.f32.mrf.mxu3  ;;  %904 = vmatmul.bf16.gmra.mxu2 %v3133_v1 }
 0x258   : > { %v937_v19 = vadd.f32 %v936_v6, %v848_v12  ;;  %v1177_v44 = vadd.f32 %v3119_v51, %v1144_v48  ;;  %v3136_v12 = vpop.f32.mrf.mxu1 }
 0x25a   : > { %v1015_v43 = vmax.f32 %v937_v19, 0.0  ;;  %v3140_v19 = vpop.f32.mrf.mxu2 }
 0x25c   : > { %v1112_v36 = vadd.f32 %v1080_v21, %v1015_v43  ;;  %978 = vmatmul.bf16.gmra.mxu3 %v3114_v40  ;;  %v1050_v21 = vadd.f32 %v3088_v28, %v2893_v17  ;;  %v853_v43 = vadd.f32 %v3056_v8, %v3084_v25 }
 0x25e   : > { %v1145_v58 = vmul.f32 %v3112_v18, %v1112_v36  ;;  %v1082_v57 = vmax.f32 %v1050_v21, 0.0 }
 0x25f   : > { %v939_v30 = vpop.f32.mrf.mxu3 }
 0x260   : > { %v1178_v31 = vadd.f32 %v3119_v51, %v1145_v58  ;;  %v940_v39 = vadd.f32 %v939_v30, %v851_v10  ;;  %v3146_v58 = vor.u32 %v2387_v14, %v2236_v15  ;;  %v3154_v8 = vpop.f32.mrf.mxu1 }
 0x262   : > { %v1209_v5 = vpack.c.bf16 %v1178_v31, %v1177_v44  ;;  %v1016_v6 = vmax.f32 %v940_v39, 0.0  ;;  %3731 = vst [vmem:[#allocation5_spill] sm:$0xff] %v3146_v58  ;;  %v3152_v17 = vpop.f32.mrf.mxu2  ;;  %v1051_v39 = vadd.f32 %v3088_v28, %v2903_v22 }
 0x264   : > { %1332 = vmatmul.bf16.vlgmr.msrb.gmra.mxu0 %v1209_v5  ;;  %1421 = vmatmul.bf16.vlgmr.msrb.gmra.mxu1 %v1209_v5  ;;  %v1113_v10 = vadd.f32 %v1081_v11, %v1016_v6  ;;  %v2258_v11 = vld [vmem:[%s2838_s8 + $0xd0] sm:$0xf]  ;;  %v2394_v6 = vld [vmem:[%s2838_s8 + $0xd4] sm:$0xf0] }
 0x265   : > { %v3163_v21 = vor.u32 %v2394_v6, %v2258_v11 }
 0x266   : > { %v1146_v61 = vmul.f32 %v3112_v18, %v1113_v10 }
 0x267   : > { %v941_v48 = vpop.f32.mrf.mxu3  ;;  %909 = vmatmul.bf16.gmra.mxu2 %v3163_v21 }
 0x268   : > { %v942_v36 = vadd.f32 %v941_v48, %v853_v43  ;;  %v1179_v38 = vadd.f32 %v3119_v51, %v1146_v61  ;;  %v1083_v48 = vmax.f32 %v1051_v39, 0.0  ;;  %v858_v61 = vadd.f32 %v3093_v53, %v3084_v25 }
 0x26a   : > { %v1017_v30 = vmax.f32 %v942_v36, 0.0  ;;  %v2389_v36 = vld [vmem:[%s2838_s8 + $0xb4] sm:$0xf]  ;;  %v3168_v22 = vpop.f32.mrf.mxu2 }
 0x26c   : > { %v1114_v44 = vadd.f32 %v1082_v57, %v1017_v30  ;;  %983 = vmatmul.bf16.gmra.mxu3 %v3146_v58  ;;  %v2244_v57 = vld [vmem:[%s2838_s8 + $0xb8] sm:$0xf0]  ;;  %v1052_v30 = vadd.f32 %v3088_v28, %v2912_v47 }
 0x26e   : > { %v1147_v31 = vmul.f32 %v3112_v18, %v1114_v44  ;;  %v3174_v44 = vpop.f32.mrf.mxu1  ;;  %v1084_v11 = vmax.f32 %v1052_v30, 0.0 }
 0x26f   : > { %v944_v5 = vpop.f32.mrf.mxu3 }
 0x270   : > { %v945_v14 = vadd.f32 %v944_v5, %v856_v0  ;;  %v1180_v15 = vadd.f32 %v3119_v51, %v1147_v31  ;;  %v3176_v5 = vor.u32 %v2389_v36, %v2244_v57  ;;  %v2396_v36 = vld [vmem:[%s2838_s8 + $0xe4] sm:$0xf0] }
 0x272   : > { %v1210_v43 = vpack.c.bf16 %v1180_v15, %v1179_v38  ;;  %v1018_v10 = vmax.f32 %v945_v14, 0.0  ;;  %3732 = vst [vmem:[#allocation6_spill] sm:$0xff] %v3176_v5  ;;  %v861_v38 = vadd.f32 %v3106_v7, %v3084_v25  ;;  %v3182_v53 = vpop.f32.mrf.mxu2 }
 0x274   : > { %1337 = vmatmul.bf16.gmra.mxu0 %v1210_v43  ;;  %1426 = vmatmul.bf16.gmra.mxu1 %v1210_v43  ;;  %v1115_v31 = vadd.f32 %v1083_v48, %v1018_v10  ;;  %v1053_v43 = vadd.f32 %v3088_v28, %v2920_v41  ;;  %v2266_v10 = vld [vmem:[%s2838_s8 + $0xe0] sm:$0xf]  ;;  %v2391_v41 = vld [vmem:[%s2838_s8 + $0xc4] sm:$0xf] }
 0x276   : > { %v1148_v14 = vmul.f32 %v3112_v18, %v1115_v31 }
 0x277   : > { %v946_v0 = vpop.f32.mrf.mxu3 }
 0x278   : > { %v947_v39 = vadd.f32 %v946_v0, %v858_v61  ;;  %v1181_v30 = vadd.f32 %v3119_v51, %v1148_v14  ;;  %v3191_v61 = vor.u32 %v2396_v36, %v2266_v10  ;;  %v3193_v0 = vpop.f32.mrf.mxu1  ;;  %v1054_v14 = vadd.f32 %v3088_v28, %v2928_v37 }
 0x27a   : > { %v1019_v6 = vmax.f32 %v947_v39, 0.0  ;;  %914 = vmatmul.bf16.gmra.mxu2 %v3191_v61  ;;  %v1085_v39 = vmax.f32 %v1053_v43, 0.0  ;;  %v1086_v43 = vmax.f32 %v1054_v14, 0.0  ;;  %v2398_v14 = vld [vmem:[%s2838_s8 + $0xf4] sm:$0xf0] }
 0x27c   : > { %v1116_v47 = vadd.f32 %v1084_v11, %v1019_v6  ;;  %988 = vmatmul.bf16.gmra.mxu3 %v3176_v5  ;;  %v2252_v6 = vld [vmem:[%s2838_s8 + $0xc8] sm:$0xf0] }
 0x27d   : > { %v3204_v36 = vor.u32 %v2391_v41, %v2252_v6  ;;  %v2274_v6 = vld [vmem:[%s2838_s8 + $0xf0] sm:$0xf] }
 0x27e   : > { %v1149_v15 = vmul.f32 %v3112_v18, %v1116_v47  ;;  %v3198_v47 = vpop.f32.mrf.mxu2 }
 0x27f   : > { %v949_v48 = vpop.f32.mrf.mxu3  ;;  %3733 = vst [vmem:[#allocation7_spill] sm:$0xff] %v3204_v36 }
 0x280   : > { %v950_v57 = vadd.f32 %v949_v48, %v861_v38  ;;  %v1182_v7 = vadd.f32 %v3119_v51, %v1149_v15  ;;  %v863_v38 = vadd.f32 %v3124_v56, %v3084_v25 }
 0x282   : > { %v1211_v31 = vpack.c.bf16 %v1182_v7, %v1181_v30  ;;  %v1020_v11 = vmax.f32 %v950_v57, 0.0  ;;  %v3206_v30 = vpop.f32.mrf.mxu1 }
 0x284   : > { %1342 = vmatmul.bf16.gmra.mxu0 %v1211_v31  ;;  %1431 = vmatmul.bf16.gmra.mxu1 %v1211_v31  ;;  %v1117_v48 = vadd.f32 %v1085_v39, %v1020_v11  ;;  %v866_v31 = vadd.f32 %v3140_v19, %v3084_v25  ;;  %v1055_v39 = vadd.f32 %v3088_v28, %v2947_v29  ;;  %v2393_v29 = vld [vmem:[%s2838_s8 + $0xd4] sm:$0xf] }
 0x286   : > { %v1150_v7 = vmul.f32 %v3112_v18, %v1117_v48  ;;  %v3215_v41 = vpop.f32.mrf.mxu2  ;;  %v3221_v48 = vor.u32 %v2398_v14, %v2274_v6 }
 0x287   : > { %v951_v15 = vpop.f32.mrf.mxu3 }
 0x288   : > { %v952_v10 = vadd.f32 %v951_v15, %v863_v38  ;;  %v1183_v15 = vadd.f32 %v3119_v51, %v1150_v7  ;;  %3734 = vst [vmem:[#allocation8_spill] sm:$0xff] %v3221_v48  ;;  %v868_v7 = vadd.f32 %v3152_v17, %v3084_v25 }
 0x28a   : > { %v1021_v57 = vmax.f32 %v952_v10, 0.0  ;;  %919 = vmatmul.bf16.gmra.mxu2 %v3221_v48  ;;  %v3228_v5 = vpop.f32.mrf.mxu1 }
 0x28c   : > { %v1118_v37 = vadd.f32 %v1086_v43, %v1021_v57  ;;  %993 = vmatmul.bf16.gmra.mxu3 %v3204_v36  ;;  %v1087_v43 = vmax.f32 %v1055_v39, 0.0  ;;  %v1056_v36 = vadd.f32 %v3088_v28, %v2972_v2 }
 0x28e   : > { %v1151_v56 = vmul.f32 %v3112_v18, %v1118_v37  ;;  %v2260_v37 = vld [vmem:[%s2838_s8 + $0xd8] sm:$0xf0]  ;;  %v880_v14 = vpop.f32.mrf.mxu2  ;;  %v1088_v39 = vmax.f32 %v1056_v36, 0.0 }
 0x28f   : > { %v954_v11 = vpop.f32.mrf.mxu3  ;;  %v3232_v6 = vor.u32 %v2393_v29, %v2260_v37 }
 0x290   : > { %v955_v38 = vadd.f32 %v954_v11, %v866_v31  ;;  %v1184_v19 = vadd.f32 %v3119_v51, %v1151_v56 }
 0x291   : > { %3735 = vst [vmem:[#allocation9_spill] sm:$0xff] %v3232_v6 }
 0x292   : > { %v1212_v10 = vpack.c.bf16 %v1184_v19, %v1183_v15  ;;  %v1022_v57 = vmax.f32 %v955_v38, 0.0  ;;  %v871_v19 = vadd.f32 %v3168_v22, %v3084_v25 }
 0x294   : > { %1347 = vmatmul.bf16.gmra.mxu0 %v1212_v10  ;;  %1436 = vmatmul.bf16.gmra.mxu1 %v1212_v10  ;;  %v1119_v56 = vadd.f32 %v1087_v43, %v1022_v57  ;;  %v1057_v43 = vadd.f32 %v3088_v28, %v3007_v42  ;;  %v3241_v57 = vpop.f32.mrf.mxu1  ;;  %v873_v42 = vadd.f32 %v3182_v53, %v3084_v25 }
 0x296   : > { %v1152_v15 = vmul.f32 %v3112_v18, %v1119_v56  ;;  %v882_v22 = vpop.f32.mrf.mxu2 }
 0x297   : > { %v956_v31 = vpop.f32.mrf.mxu3 }
 0x298   : > { %v957_v11 = vadd.f32 %v956_v31, %v868_v7  ;;  %v1185_v29 = vadd.f32 %v3119_v51, %v1152_v15  ;;  %v1089_v31 = vmax.f32 %v1057_v43, 0.0 }
 0x29a   : > { %v1023_v38 = vmax.f32 %v957_v11, 0.0  ;;  %v2395_v11 = vld [vmem:[%s2838_s8 + $0xe4] sm:$0xf] }
 0x29c   : > { %v1120_v2 = vadd.f32 %v1088_v39, %v1023_v38  ;;  %998 = vmatmul.bf16.gmra.mxu3 %v3232_v6  ;;  %v2268_v39 = vld [vmem:[%s2838_s8 + $0xe8] sm:$0xf0]  ;;  %v1058_v38 = vadd.f32 %v3088_v28, %v3053_v54 }
 0x29d   : > { %v3251_v15 = vor.u32 %v2395_v11, %v2268_v39 }
 0x29e   : > { %v1153_v17 = vmul.f32 %v3112_v18, %v1120_v2  ;;  %v885_v54 = vpop.f32.mrf.mxu2 }
 0x29f   : > { %v959_v10 = vpop.f32.mrf.mxu3  ;;  %3736 = vst [vmem:[#allocation10_spill] sm:$0xff] %v3251_v15 }
 0x2a0   : > { %v960_v36 = vadd.f32 %v959_v10, %v871_v19  ;;  %v1186_v37 = vadd.f32 %v3119_v51, %v1153_v17  ;;  %v1090_v17 = vmax.f32 %v1058_v38, 0.0 }
 0x2a2   : > { %v1213_v7 = vpack.c.bf16 %v1186_v37, %v1185_v29  ;;  %v1024_v56 = vmax.f32 %v960_v36, 0.0  ;;  %v3253_v29 = vpop.f32.mrf.mxu1  ;;  %v876_v37 = vadd.f32 %v3198_v47, %v3084_v25 }
 0x2a4   : > { %1352 = vmatmul.bf16.gmra.mxu0 %v1213_v7  ;;  %1441 = vmatmul.bf16.gmra.mxu1 %v1213_v7  ;;  %v1121_v19 = vadd.f32 %v1089_v31, %v1024_v56  ;;  %v1059_v56 = vadd.f32 %v3088_v28, %v3082_v34  ;;  %v878_v34 = vadd.f32 %v3215_v41, %v3084_v25 }
 0x2a6   : > { %v1154_v36 = vmul.f32 %v3112_v18, %v1121_v19 }
 0x2a7   : > { %v961_v2 = vpop.f32.mrf.mxu3 }
 0x2a8   : > { %v962_v10 = vadd.f32 %v961_v2, %v873_v42  ;;  %v1187_v39 = vadd.f32 %v3119_v51, %v1154_v36  ;;  %v1091_v2 = vmax.f32 %v1059_v56, 0.0 }
 0x2aa   : > { %v1025_v43 = vmax.f32 %v962_v10, 0.0  ;;  %v3264_v47 = vpop.f32.mrf.mxu1  ;;  %v2397_v10 = vld [vmem:[%s2838_s8 + $0xf4] sm:$0xf] }
 0x2ac   : > { %v1122_v7 = vadd.f32 %v1090_v17, %v1025_v43  ;;  %1003 = vmatmul.bf16.gmra.mxu3 %v3251_v15  ;;  %v2276_v17 = vld [vmem:[%s2838_s8 + $0xf8] sm:$0xf0]  ;;  %v1060_v43 = vadd.f32 %v3088_v28, %v3099_v60 }
 0x2ae   : > { %v1155_v53 = vmul.f32 %v3112_v18, %v1122_v7  ;;  %v887_v7 = vpop.f32.mrf.mxu2  ;;  %v1092_v56 = vmax.f32 %v1060_v43, 0.0 }
 0x2af   : > { %v964_v31 = vpop.f32.mrf.mxu3 }
 0x2b0   : > { %v965_v11 = vadd.f32 %v964_v31, %v876_v37  ;;  %v1188_v38 = vadd.f32 %v3119_v51, %v1155_v53  ;;  %v3272_v53 = vor.u32 %v2397_v10, %v2276_v17 }
 0x2b2   : > { %v1214_v42 = vpack.c.bf16 %v1188_v38, %v1187_v39  ;;  %v1026_v19 = vmax.f32 %v965_v11, 0.0  ;;  %3737 = vst [vmem:[#allocation11_spill] sm:$0xff] %v3272_v53  ;;  %v881_v38 = vadd.f32 %v880_v14, %v3084_v25  ;;  %v3277_v15 = vpop.f32.mrf.mxu1 }
 0x2b4   : > { %1357 = vmatmul.bf16.gmra.mxu0 %v1214_v42  ;;  %1446 = vmatmul.bf16.gmra.mxu1 %v1214_v42  ;;  %v1123_v36 = vadd.f32 %v1091_v2, %v1026_v19  ;;  %v1061_v2 = vadd.f32 %v3088_v28, %v3116_v45 }
 0x2b6   : > { %v1156_v11 = vmul.f32 %v3112_v18, %v1123_v36  ;;  %v890_v43 = vpop.f32.mrf.mxu2  ;;  %v1062_v36 = vadd.f32 %v3088_v28, %v3136_v12  ;;  %v1063_v12 = vadd.f32 %v3088_v28, %v3154_v8 }
 0x2b7   : > { %v966_v37 = vpop.f32.mrf.mxu3 }
 0x2b8   : > { %v967_v31 = vadd.f32 %v966_v37, %v878_v34  ;;  %v1189_v10 = vadd.f32 %v3119_v51, %v1156_v11  ;;  %v1093_v37 = vmax.f32 %v1061_v2, 0.0  ;;  %v886_v2 = vadd.f32 %v885_v54, %v3084_v25 }
 0x2ba   : > { %v1027_v39 = vmax.f32 %v967_v31, 0.0  ;;  %v883_v31 = vadd.f32 %v882_v22, %v3084_v25 }
 0x2bc   : > { %v1124_v42 = vadd.f32 %v1092_v56, %v1027_v39  ;;  %1008 = vmatmul.bf16.gmra.mxu3 %v3272_v53  ;;  %v3287_v39 = vpop.f32.mrf.mxu1 }
 0x2be   : > { %v1157_v60 = vmul.f32 %v3112_v18, %v1124_v42  ;;  %v1094_v42 = vmax.f32 %v1062_v36, 0.0 }
 0x2bf   : > { %v969_v41 = vpop.f32.mrf.mxu3 }
 0x2c0   : > { %v970_v19 = vadd.f32 %v969_v41, %v881_v38  ;;  %v1190_v17 = vadd.f32 %v3119_v51, %v1157_v60  ;;  %v892_v41 = vpop.f32.mrf.mxu2 }
 0x2c2   : > { %v1215_v34 = vpack.c.bf16 %v1190_v17, %v1189_v10  ;;  %v1028_v14 = vmax.f32 %v970_v19, 0.0 }
 0x2c4   : > { %1362 = vmatmul.bf16.gmra.mxu0 %v1215_v34  ;;  %1451 = vmatmul.bf16.gmra.mxu1 %v1215_v34  ;;  %v1125_v45 = vadd.f32 %v1093_v37, %v1028_v14  ;;  %v3296_v14 = vpop.f32.mrf.mxu1 }
 0x2c6   : > { %v1158_v60 = vmul.f32 %v3112_v18, %v1125_v45  ;;  %v1064_v45 = vadd.f32 %v3088_v28, %v3174_v44  ;;  %v1065_v44 = vadd.f32 %v3088_v28, %v3193_v0 }
 0x2c7   : > { %v971_v56 = vpop.f32.mrf.mxu3 }
 0x2c8   : > { %v972_v38 = vadd.f32 %v971_v56, %v883_v31  ;;  %v1191_v34 = vadd.f32 %v3119_v51, %v1158_v60  ;;  %v1095_v31 = vmax.f32 %v1063_v12, 0.0  ;;  %v895_v54 = vpop.f32.mrf.mxu2 }
 0x2ca   : > { %v1029_v11 = vmax.f32 %v972_v38, 0.0  ;;  %v888_v38 = vadd.f32 %v887_v7, %v3084_v25 }
 0x2cc   : > { %v1126_v19 = vadd.f32 %v1094_v42, %v1029_v11 }
 0x2ce   : > { %v1159_v10 = vmul.f32 %v3112_v18, %v1126_v19  ;;  %v3301_v19 = vpop.f32.mrf.mxu1 }
 0x2cf   : > { %v974_v17 = vpop.f32.mrf.mxu3 }
 0x2d0   : > { %v975_v22 = vadd.f32 %v974_v17, %v886_v2  ;;  %v1192_v37 = vadd.f32 %v3119_v51, %v1159_v10  ;;  %v1096_v2 = vmax.f32 %v1064_v45, 0.0  ;;  %v891_v17 = vadd.f32 %v890_v43, %v3084_v25 }
 0x2d1   : > { %v1066_v43 = vadd.f32 %v3088_v28, %v3206_v30 }
 0x2d2   : > { %v1216_v36 = vpack.c.bf16 %v1192_v37, %v1191_v34  ;;  %v1030_v56 = vmax.f32 %v975_v22, 0.0  ;;  %v897_v37 = vpop.f32.mrf.mxu2 }
 0x2d4   : > { %1367 = vmatmul.bf16.gmra.mxu0 %v1216_v36  ;;  %1456 = vmatmul.bf16.gmra.mxu1 %v1216_v36  ;;  %v1127_v8 = vadd.f32 %v1095_v31, %v1030_v56 }
 0x2d6   : > { %v1160_v10 = vmul.f32 %v3112_v18, %v1127_v8  ;;  %v3314_v8 = vpop.f32.mrf.mxu1 }
 0x2d7   : > { %v976_v42 = vpop.f32.mrf.mxu3 }
 0x2d8   : > { %v977_v11 = vadd.f32 %v976_v42, %v888_v38  ;;  %v1193_v36 = vadd.f32 %v3119_v51, %v1160_v10  ;;  %v1097_v38 = vmax.f32 %v1065_v44, 0.0 }
 0x2da   : > { %v1031_v60 = vmax.f32 %v977_v11, 0.0  ;;  %v893_v11 = vadd.f32 %v892_v41, %v3084_v25  ;;  %v1067_v41 = vadd.f32 %v3088_v28, %v3228_v5  ;;  %v898_v5 = vadd.f32 %v897_v37, %v3084_v25 }
 0x2dc   : > { %v1128_v12 = vadd.f32 %v1096_v2, %v1031_v60 }
 0x2de   : > { %v1161_v22 = vmul.f32 %v3112_v18, %v1128_v12  ;;  %v1098_v12 = vmax.f32 %v1066_v43, 0.0 }
 0x2df   : > { %v979_v34 = vpop.f32.mrf.mxu3 }
 0x2e0   : > { %v980_v7 = vadd.f32 %v979_v34, %v891_v17  ;;  %v1194_v31 = vadd.f32 %v3119_v51, %v1161_v22  ;;  %v900_v17 = vpop.f32.mrf.mxu2 }
 0x2e1   : > { %v3310_v56 = vpop.f32.mrf.mxu0 }
 0x2e2   : > { %v1217_v45 = vpack.c.bf16 %v1194_v31, %v1193_v36  ;;  %v1032_v42 = vmax.f32 %v980_v7, 0.0  ;;  %v896_v7 = vadd.f32 %v895_v54, %v3084_v25 }
 0x2e4   : > { %1372 = vmatmul.bf16.gmra.mxu0 %v1217_v45  ;;  %1461 = vmatmul.bf16.gmra.mxu1 %v1217_v45  ;;  %v1129_v2 = vadd.f32 %v1097_v38, %v1032_v42  ;;  %v3326_v45 = vpop.f32.mrf.mxu1 }
 0x2e6   : > { %v1162_v44 = vmul.f32 %v3112_v18, %v1129_v2 }
 0x2e7   : > { %v981_v0 = vpop.f32.mrf.mxu3 }
 0x2e8   : > { %v982_v60 = vadd.f32 %v981_v0, %v893_v11  ;;  %v1195_v42 = vadd.f32 %v3119_v51, %v1162_v44  ;;  %v902_v2 = vpop.f32.mrf.mxu2 }
 0x2e9   : > { %v3317_v10 = vpop.f32.mrf.mxu0 }
 0x2ea   : > { %v1033_v22 = vmax.f32 %v982_v60, 0.0  ;;  %v1099_v60 = vmax.f32 %v1067_v41, 0.0 }
 0x2ec   : > { %v1130_v30 = vadd.f32 %v1098_v12, %v1033_v22  ;;  %v1068_v12 = vadd.f32 %v3088_v28, %v3241_v57 }
 0x2ee   : > { %v1163_v36 = vmul.f32 %v3112_v18, %v1130_v30  ;;  %v1100_v44 = vmax.f32 %v1068_v12, 0.0 }
 0x2ef   : > { %v984_v31 = vpop.f32.mrf.mxu3 }
 0x2f0   : > { %v985_v38 = vadd.f32 %v984_v31, %v896_v7  ;;  %v1196_v43 = vadd.f32 %v3119_v51, %v1163_v36  ;;  %v3337_v36 = vpop.f32.mrf.mxu1  ;;  %v905_v57 = vpop.f32.mrf.mxu2 }
 0x2f1   : > { %v3330_v11 = vpop.f32.mrf.mxu0 }
 0x2f2   : > { %v1218_v0 = vpack.c.bf16 %v1196_v43, %v1195_v42  ;;  %v1034_v54 = vmax.f32 %v985_v38, 0.0  ;;  %v901_v42 = vadd.f32 %v900_v17, %v3084_v25 }
 0x2f4   : > { %1377 = vmatmul.bf16.gmra.mxu0 %v1218_v0  ;;  %1466 = vmatmul.bf16.gmra.mxu1 %v1218_v0  ;;  %v1131_v30 = vadd.f32 %v1099_v60, %v1034_v54  ;;  %v1069_v60 = vadd.f32 %v3088_v28, %v3253_v29 }
 0x2f6   : > { %v1164_v38 = vmul.f32 %v3112_v18, %v1131_v30  ;;  %v1101_v41 = vmax.f32 %v1069_v60, 0.0 }
 0x2f7   : > { %v986_v22 = vpop.f32.mrf.mxu3 }
 0x2f8   : > { %v987_v7 = vadd.f32 %v986_v22, %v898_v5  ;;  %v1197_v12 = vadd.f32 %v3119_v51, %v1164_v38  ;;  %v3350_v30 = vpop.f32.mrf.mxu1 }
 0x2f9   : > { %v3335_v31 = vpop.f32.mrf.mxu0 }
 0x2fa   : > { %v1035_v34 = vmax.f32 %v987_v7, 0.0 }
 0x2fc   : > { %v1132_v43 = vadd.f32 %v1100_v44, %v1035_v34  ;;  %v1070_v34 = vadd.f32 %v3088_v28, %v3264_v47  ;;  %v903_v44 = vadd.f32 %v902_v2, %v3084_v25 }
 0x2fe   : > { %v1165_v37 = vmul.f32 %v3112_v18, %v1132_v43 }
 0x2ff   : > { %v989_v0 = vpop.f32.mrf.mxu3 }
 0x300   : > { %v990_v54 = vadd.f32 %v989_v0, %v901_v42  ;;  %v1198_v5 = vadd.f32 %v3119_v51, %v1165_v37  ;;  %v907_v42 = vpop.f32.mrf.mxu2  ;;  %v1102_v37 = vmax.f32 %v1070_v34, 0.0 }
 0x301   : > { %v3348_v22 = vpop.f32.mrf.mxu0 }
 0x302   : > { %v1219_v7 = vpack.c.bf16 %v1198_v5, %v1197_v12  ;;  %v1036_v17 = vmax.f32 %v990_v54, 0.0  ;;  %v906_v12 = vadd.f32 %v905_v57, %v3084_v25 }
 0x304   : > { %1382 = vmatmul.bf16.gmra.mxu0 %v1219_v7  ;;  %1471 = vmatmul.bf16.gmra.mxu1 %v1219_v7  ;;  %v1133_v43 = vadd.f32 %v1101_v41, %v1036_v17  ;;  %v3361_v7 = vpop.f32.mrf.mxu1  ;;  %v1071_v41 = vadd.f32 %v3088_v28, %v3277_v15 }
 0x306   : > { %v1166_v54 = vmul.f32 %v3112_v18, %v1133_v43  ;;  %v1103_v60 = vmax.f32 %v1071_v41, 0.0 }
 0x307   : > { %v991_v29 = vpop.f32.mrf.mxu3 }
 0x308   : > { %v992_v38 = vadd.f32 %v991_v29, %v903_v44  ;;  %v1199_v34 = vadd.f32 %v3119_v51, %v1166_v54 }
 0x309   : > { %v3355_v0 = vpop.f32.mrf.mxu0 }
 0x30a   : > { %v1037_v53 = vmax.f32 %v992_v38, 0.0  ;;  %v910_v38 = vpop.f32.mrf.mxu2 }
 0x30c   : > { %v1134_v5 = vadd.f32 %v1102_v37, %v1037_v53  ;;  %v1072_v53 = vadd.f32 %v3088_v28, %v3287_v39  ;;  %v908_v37 = vadd.f32 %v907_v42, %v3084_v25  ;;  %v3373_v15 = vpop.f32.mrf.mxu1 }
 0x30e   : > { %v1167_v47 = vmul.f32 %v3112_v18, %v1134_v5 }
 0x30f   : > { %v994_v2 = vpop.f32.mrf.mxu3 }
 0x310   : > { %v995_v17 = vadd.f32 %v994_v2, %v906_v12  ;;  %v1200_v44 = vadd.f32 %v3119_v51, %v1167_v47  ;;  %v1104_v47 = vmax.f32 %v1072_v53, 0.0 }
 0x311   : > { %v3368_v29 = vpop.f32.mrf.mxu0 }
 0x312   : > { %v1220_v43 = vpack.c.bf16 %v1200_v44, %v1199_v34  ;;  %v1038_v57 = vmax.f32 %v995_v17, 0.0  ;;  %v912_v17 = vpop.f32.mrf.mxu2  ;;  %v911_v44 = vadd.f32 %v910_v38, %v3084_v25  ;;  %v1074_v38 = vadd.f32 %v3088_v28, %v3301_v19 }
 0x314   : > { %1387 = vmatmul.bf16.gmra.mxu0 %v1220_v43  ;;  %1476 = vmatmul.bf16.gmra.mxu1 %v1220_v43  ;;  %v1135_v12 = vadd.f32 %v1103_v60, %v1038_v57  ;;  %v1073_v60 = vadd.f32 %v3088_v28, %v3296_v14  ;;  %v913_v14 = vadd.f32 %v912_v17, %v3084_v25 }
 0x315   : > { %v1075_v17 = vadd.f32 %v3088_v28, %v3314_v8 }
 0x316   : > { %v1168_v34 = vmul.f32 %v3112_v18, %v1135_v12  ;;  %v1105_v12 = vmax.f32 %v1073_v60, 0.0 }
 0x317   : > { %v996_v5 = vpop.f32.mrf.mxu3 }
 0x318   : > { %v997_v54 = vadd.f32 %v996_v5, %v908_v37  ;;  %v1201_v37 = vadd.f32 %v3119_v51, %v1168_v34 }
 0x319   : > { %v3375_v2 = vpop.f32.mrf.mxu0 }
 0x31a   : > { %v1039_v6 = vmax.f32 %v997_v54, 0.0  ;;  %v3388_v54 = vpop.f32.mrf.mxu1 }
 0x31c   : > { %v1136_v39 = vadd.f32 %v1104_v47, %v1039_v6  ;;  %v915_v6 = vpop.f32.mrf.mxu2 }
 0x31e   : > { %v1169_v42 = vmul.f32 %v3112_v18, %v1136_v39 }
 0x31f   : > { %v999_v43 = vpop.f32.mrf.mxu3 }
 0x320   : > { %v1000_v57 = vadd.f32 %v999_v43, %v911_v44  ;;  %v1202_v53 = vadd.f32 %v3119_v51, %v1169_v42  ;;  %v1106_v42 = vmax.f32 %v1074_v38, 0.0 }
 0x321   : > { %v3386_v5 = vpop.f32.mrf.mxu0 }
 0x322   : > { %v1221_v41 = vpack.c.bf16 %v1202_v53, %v1201_v37  ;;  %v1040_v58 = vmax.f32 %v1000_v57, 0.0  ;;  %v3395_v48 = vpop.f32.mrf.mxu1  ;;  %v916_v57 = vadd.f32 %v915_v6, %v3084_v25  ;;  %v1076_v6 = vadd.f32 %v3088_v28, %v3326_v45 }
 0x323   : > { %3738 = vst [vmem:[#allocation12_spill] sm:$0xff] %v3395_v48  ;;  %v1077_v45 = vadd.f32 %v3088_v28, %v3337_v36 }
 0x324   : > { %1392 = vmatmul.bf16.gmra.mxu0 %v1221_v41  ;;  %1481 = vmatmul.bf16.gmra.mxu1 %v1221_v41  ;;  %v1137_v44 = vadd.f32 %v1105_v12, %v1040_v58  ;;  %v917_v53 = vpop.f32.mrf.mxu2 }
 0x326   : > { %v1170_v60 = vmul.f32 %v3112_v18, %v1137_v44 }
 0x327   : > { %v1001_v47 = vpop.f32.mrf.mxu3 }
 0x328   : > { %v1002_v34 = vadd.f32 %v1001_v47, %v913_v14  ;;  %v1203_v12 = vadd.f32 %v3119_v51, %v1170_v60 }
 0x329   : > { %v3393_v39 = vpop.f32.mrf.mxu0 }
 0x32a   : > { %v1041_v43 = vmax.f32 %v1002_v34, 0.0  ;;  %v1107_v34 = vmax.f32 %v1075_v17, 0.0  ;;  %v3406_v44 = vpop.f32.mrf.mxu1 }
 0x32b   : > { %3739 = vst [vmem:[#allocation13_spill] sm:$0xff] %v3406_v44 }
 0x32c   : > { %v1138_v41 = vadd.f32 %v1106_v42, %v1041_v43  ;;  %v918_v42 = vadd.f32 %v917_v53, %v3084_v25 }
 0x32e   : > { %v1171_v37 = vmul.f32 %v3112_v18, %v1138_v41  ;;  %v920_v41 = vpop.f32.mrf.mxu2 }
 0x32f   : > { %v1004_v19 = vpop.f32.mrf.mxu3  ;;  %v921_v17 = vadd.f32 %v920_v41, %v3084_v25  ;;  %v1078_v41 = vadd.f32 %v3088_v28, %v3350_v30 }
 0x330   : > { %v1005_v58 = vadd.f32 %v1004_v19, %v916_v57  ;;  %v1204_v38 = vadd.f32 %v3119_v51, %v1171_v37  ;;  %v1108_v19 = vmax.f32 %v1076_v6, 0.0 }
 0x331   : > { %v1358_v14 = vpop.f32.mrf.mxu0 }
 0x332   : > { %v1222_v47 = vpack.c.bf16 %v1204_v38, %v1203_v12  ;;  %v1042_v48 = vmax.f32 %v1005_v58, 0.0  ;;  %v3414_v44 = vpop.f32.mrf.mxu1 }
 0x334   : > { %1397 = vmatmul.bf16.gmra.mxu0 %v1222_v47  ;;  %1486 = vmatmul.bf16.gmra.mxu1 %v1222_v47  ;;  %v1139_v8 = vadd.f32 %v1107_v34, %v1042_v48 }
 0x336   : > { %v1172_v12 = vmul.f32 %v3112_v18, %v1139_v8  ;;  %v1109_v8 = vmax.f32 %v1077_v45, 0.0 }
 0x337   : > { %v1006_v43 = vpop.f32.mrf.mxu3 }
 0x338   : > { %v1007_v57 = vadd.f32 %v1006_v43, %v918_v42  ;;  %v1205_v48 = vadd.f32 %v3119_v51, %v1172_v12  ;;  %v922_v43 = vpop.f32.mrf.mxu2 }
 0x339   : > { %v1360_v60 = vpop.f32.mrf.mxu0 }
 0x33a   : > { %v1043_v37 = vmax.f32 %v1007_v57, 0.0  ;;  %v3421_v12 = vpop.f32.mrf.mxu1 }
 0x33c   : > { %v1140_v58 = vadd.f32 %v1108_v19, %v1043_v37  ;;  %v923_v19 = vadd.f32 %v922_v43, %v3084_v25 }
 0x33e   : > { %v1173_v38 = vmul.f32 %v3112_v18, %v1140_v58 }
 0x33f   : > { %v1009_v47 = vpop.f32.mrf.mxu3 }
 0x340   : > { %v1010_v53 = vadd.f32 %v1009_v47, %v921_v17  ;;  %v1206_v34 = vadd.f32 %v3119_v51, %v1173_v38  ;;  %v1110_v47 = vmax.f32 %v1078_v41, 0.0 }
 0x341   : > { %v1363_v6 = vpop.f32.mrf.mxu0 }
 0x342   : > { %v1223_v42 = vpack.c.bf16 %v1206_v34, %v1205_v48  ;;  %v1044_v57 = vmax.f32 %v1010_v53, 0.0  ;;  %v3427_v25 = vpop.f32.mrf.mxu1 }
 0x344   : > { %1402 = vmatmul.bf16.gmra.mxu0 %v1223_v42  ;;  %1491 = vmatmul.bf16.gmra.mxu1 %v1223_v42  ;;  %v1141_v37 = vadd.f32 %v1109_v8, %v1044_v57 }
 0x346   : > { %v1174_v48 = vmul.f32 %v3112_v18, %v1141_v37  ;;  %v3740_v37 = vpack.c.bf16 %v3375_v2, %v3368_v29 }
 0x347   : > { %v1011_v36 = vpop.f32.mrf.mxu3 }
 0x348   : > { %v1012_v58 = vadd.f32 %v1011_v36, %v923_v19  ;;  %v1207_v53 = vadd.f32 %v3119_v51, %v1174_v48  ;;  %v1507_v19 = vpack.c.bf16 %v1360_v60, %v1358_v14  ;;  %v3743_v14 = vpack.c.bf16 %v3317_v10, %v3310_v56 }
 0x349   : > { %v1365_v17 = vpop.f32.mrf.mxu0 }
 0x34a   : > { %v1045_v38 = vmax.f32 %v1012_v58, 0.0  ;;  %v1508_v57 = vpack.c.bf16 %v1365_v17, %v1363_v6  ;;  %v3741_v58 = vpack.c.bf16 %v3355_v0, %v3348_v22  ;;  %v3742_v6 = vpack.c.bf16 %v3335_v31, %v3330_v11 }
 0x34c   : > { %v1142_v34 = vadd.f32 %v1110_v47, %v1045_v38 }
 0x34e   : > { %v1175_v45 = vmul.f32 %v3112_v18, %v1142_v34  ;;  %v1506_v18 = vpack.c.bf16 %v3393_v39, %v3386_v5 }
 0x350   : > { %v1208_v42 = vadd.f32 %v3119_v51, %v1175_v45 }
 0x351   : > { %v1368_v28 = vpop.f32.mrf.mxu0 }
 0x352   : > { %v1224_v30 = vpack.c.bf16 %v1208_v42, %v1207_v53 }
 0x354   : > { %1407 = vmatmul.bf16.gmra.mxu0 %v1224_v30  ;;  %1496 = vmatmul.bf16.gmra.mxu1 %v1224_v30 }
 0x359   : > { %v1370_v43 = vpop.f32.mrf.mxu0 }
 0x35a   : > { %v1509_v8 = vpack.c.bf16 %v1370_v43, %v1368_v28 }
 0x35c   : > { %1519 = vmatpush.bf16.msrb.mxu2 %v1509_v8 }
 0x360   : > { %1520 = vmatpush.bf16.msrb.mxu2 %v1508_v57  ;;  %v3496_v57 = vpop.f32.mrf.mxu1 }
 0x361   : > { %v1373_v41 = vpop.f32.mrf.mxu0 }
 0x364   : > { %1521 = vmatpush.bf16.msrb.mxu2 %v1507_v19 }
 0x368   : > { %1522 = vmatpush.bf16.msrb.mxu2 %v1506_v18  ;;  %v3744_v18 = vld [vmem:[#allocation8_spill] sm:$0xff] }
 0x369   : > { %v1375_v36 = vpop.f32.mrf.mxu0 }
 0x36a   : > { %v1510_v51 = vpack.c.bf16 %v1375_v36, %v1373_v41 }
 0x36c   : > { %1523 = vmatpush.bf16.msrb.mxu2 %v3740_v37 }
 0x370   : > { %1524 = vmatpush.bf16.msrb.mxu2 %v3741_v58 }
 0x371   : > { %v1378_v47 = vpop.f32.mrf.mxu0 }
 0x374   : > { %1525 = vmatpush.bf16.msrb.mxu2 %v3742_v6 }
 0x378   : > { %1526 = vmatpush.bf16.msrb.mxu2 %v3743_v14 }
 0x379   : > { %v1380_v5 = vpop.f32.mrf.mxu0 }
 0x37a   : > { %v1511_v39 = vpack.c.bf16 %v1380_v5, %v1378_v47 }
 0x37b   : > { %1527 = vmatmul.bf16.vlgmr.msrb.gmra.mxu2 %v2842_v27 }
 0x381   : > { %v1383_v60 = vpop.f32.mrf.mxu0 }
 0x389   : > { %v1385_v29 = vpop.f32.mrf.mxu0 }
 0x38a   : > { %v1512_v2 = vpack.c.bf16 %v1385_v29, %v1383_v60  ;;  %v3510_v29 = vpop.f32.mrf.mxu1 }
 0x38b   : > { %1532 = vmatmul.bf16.gmra.mxu2 %v2848_v55 }
 0x391   : > { %v1388_v22 = vpop.f32.mrf.mxu0 }
 0x399   : > { %v1390_v0 = vpop.f32.mrf.mxu0 }
 0x39a   : > { %v1513_v17 = vpack.c.bf16 %v1390_v0, %v1388_v22 }
 0x39b   : > { %1537 = vmatmul.bf16.gmra.mxu2 %v2854_v62 }
 0x3a1   : > { %v1393_v11 = vpop.f32.mrf.mxu0 }
 0x3a9   : > { %v1395_v31 = vpop.f32.mrf.mxu0 }
 0x3aa   : > { %v1514_v53 = vpack.c.bf16 %v1395_v31, %v1393_v11 }
 0x3ab   : > { %1542 = vmatmul.bf16.gmra.mxu2 %v2869_v32 }
 0x3b1   : > { %v1398_v56 = vpop.f32.mrf.mxu0 }
 0x3b9   : > { %v1400_v10 = vpop.f32.mrf.mxu0 }
 0x3ba   : > { %v1515_v62 = vpack.c.bf16 %v1400_v10, %v1398_v56  ;;  %v3746_v10 = vld [vmem:[#allocation5_spill] sm:$0xff] }
 0x3bb   : > { %1547 = vmatmul.bf16.gmra.mxu2 %v2882_v13 }
 0x3c1   : > { %v1403_v38 = vpop.f32.mrf.mxu0 }
 0x3c9   : > { %v1405_v27 = vpop.f32.mrf.mxu0 }
 0x3ca   : > { %v1516_v45 = vpack.c.bf16 %v1405_v27, %v1403_v38 }
 0x3cb   : > { %1552 = vmatmul.bf16.gmra.mxu2 %v2897_v20  ;;  %v2296_v20 = vld [vmem:[%s3720_s3 + $0x4] sm:$0xf] }
 0x3d1   : > { %v1408_v48 = vpop.f32.mrf.mxu0 }
 0x3d9   : > { %v1410_v34 = vpop.f32.mrf.mxu0 }
 0x3da   : > { %v1517_v55 = vpack.c.bf16 %v1410_v34, %v1408_v48  ;;  %v3747_v48 = vld [vmem:[#allocation13_spill] sm:$0xff] }
 0x3db   : > { %1557 = vmatmul.bf16.gmra.mxu2 %v2910_v49  ;;  %v3470_v49 = vperm.slane %v2296_v20, 1 }
 0x3dc   : > { %1608 = vmatpush.bf16.msrb.mxu3 %v1517_v55 }
 0x3dd   : > { %v1732_v36 = vadd.f32 %v3470_v49, %v3388_v54  ;;  %v1734_v34 = vadd.f32 %v3470_v49, %v3747_v48 }
 0x3df   : > { %v1764_v6 = vmax.f32 %v1732_v36, 0.0 }
 0x3e0   : > { %1609 = vmatpush.bf16.msrb.mxu3 %v1516_v45 }
 0x3e4   : > { %1610 = vmatpush.bf16.msrb.mxu3 %v1515_v62  ;;  %v3521_v62 = vpop.f32.mrf.mxu1 }
 0x3e8   : > { %1611 = vmatpush.bf16.msrb.mxu3 %v1514_v53 }
 0x3eb   : > { %1562 = vmatmul.bf16.gmra.mxu2 %v2925_v24 }
 0x3ec   : > { %1612 = vmatpush.bf16.msrb.mxu3 %v1513_v17 }
 0x3f0   : > { %1613 = vmatpush.bf16.msrb.mxu3 %v1512_v2 }
 0x3f4   : > { %1614 = vmatpush.bf16.msrb.mxu3 %v1511_v39  ;;  %v3745_v39 = vld [vmem:[#allocation12_spill] sm:$0xff] }
 0x3f5   : > { %v1733_v60 = vadd.f32 %v3470_v49, %v3745_v39 }
 0x3f7   : > { %v1765_v11 = vmax.f32 %v1733_v60, 0.0  ;;  %v3749_v60 = vld [vmem:[#allocation7_spill] sm:$0xff] }
 0x3f8   : > { %1615 = vmatpush.bf16.msrb.mxu3 %v1510_v51 }
 0x3fb   : > { %1616 = vmatmul.bf16.vlgmr.msrb.gmra.mxu3 %v2862_v3  ;;  %1567 = vmatmul.bf16.gmra.mxu2 %v2949_v35 }
 0x3fe   : > { %v1528_v32 = vpop.f32.mrf.mxu2 }
 0x406   : > { %v1530_v3 = vpop.f32.mrf.mxu2 }
 0x40b   : > { %1621 = vmatmul.bf16.gmra.mxu3 %v2875_v9  ;;  %1572 = vmatmul.bf16.gmra.mxu2 %v3005_v50 }
 0x40e   : > { %v1533_v9 = vpop.f32.mrf.mxu2 }
 0x416   : > { %v1535_v13 = vpop.f32.mrf.mxu2 }
 0x41b   : > { %1626 = vmatmul.bf16.gmra.mxu3 %v2890_v16  ;;  %1577 = vmatmul.bf16.gmra.mxu2 %v3072_v46  ;;  %v3480_v46 = vperm.slane %v2296_v20, 2 }
 0x41e   : > { %v1538_v16 = vpop.f32.mrf.mxu2 }
 0x426   : > { %v3474_v24 = vpop.f32.mrf.mxu2 }
 0x42b   : > { %1631 = vmatmul.bf16.gmra.mxu3 %v2905_v23  ;;  %1582 = vmatmul.bf16.gmra.mxu2 %v3101_v63  ;;  %v3468_v23 = vperm.slane %v2296_v20, 0 }
 0x42d   : > { %v1536_v54 = vadd.f32 %v1535_v13, %v3468_v23  ;;  %v1539_v38 = vadd.f32 %v1538_v16, %v3468_v23  ;;  %v1735_v16 = vadd.f32 %v3470_v49, %v3414_v44 }
 0x43b   : > { %1636 = vmatmul.bf16.gmra.mxu3 %v2918_v52  ;;  %1587 = vmatmul.bf16.gmra.mxu2 %v3133_v1  ;;  %v1529_v52 = vadd.f32 %v1528_v32, %v3468_v23  ;;  %v3486_v1 = vpop.f32.mrf.mxu2 }
 0x43c   : > { %v1544_v44 = vadd.f32 %v3486_v1, %v3468_v23  ;;  %v1737_v1 = vadd.f32 %v3470_v49, %v3427_v25  ;;  %v1738_v25 = vadd.f32 %v3470_v49, %v3496_v57 }
 0x443   : > { %v3500_v19 = vpop.f32.mrf.mxu2 }
 0x44b   : > { %1641 = vmatmul.bf16.gmra.mxu3 %v2933_v33  ;;  %1592 = vmatmul.bf16.gmra.mxu2 %v3163_v21  ;;  %v1730_v33 = vadd.f32 %v3470_v49, %v3361_v7  ;;  %v1731_v21 = vadd.f32 %v3470_v49, %v3373_v15  ;;  %v1531_v7 = vadd.f32 %v1530_v3, %v3468_v23  ;;  %v1548_v5 = vpop.f32.mrf.mxu2  ;;  %v1766_v3 = vmax.f32 %v1734_v34, 0.0 }
 0x44c   : > { %v1534_v15 = vadd.f32 %v1533_v9, %v3468_v23 }
 0x44d   : > { %v1762_v50 = vmax.f32 %v1730_v33, 0.0  ;;  %v1763_v43 = vmax.f32 %v1731_v21, 0.0  ;;  %v1541_v33 = vadd.f32 %v3474_v24, %v3468_v23  ;;  %v1736_v24 = vadd.f32 %v3470_v49, %v3421_v12 }
 0x44e   : > { %v1546_v12 = vadd.f32 %v3500_v19, %v3468_v23 }
 0x453   : > { %v1550_v27 = vpop.f32.mrf.mxu2 }
 0x454   : > { %v1551_v57 = vadd.f32 %v1550_v27, %v3468_v23 }
 0x45b   : > { %1646 = vmatmul.bf16.gmra.mxu3 %v2974_v4  ;;  %1597 = vmatmul.bf16.gmra.mxu2 %v3191_v61 }
 0x46b   : > { %1651 = vmatmul.bf16.gmra.mxu3 %v3039_v59  ;;  %1602 = vmatmul.bf16.gmra.mxu2 %v3744_v18 }
 0x47b   : > { %1656 = vmatmul.bf16.gmra.mxu3 %v3086_v26  ;;  %v3484_v26 = vperm.slane %v2296_v20, 3  ;;  %v1553_v20 = vpop.f32.mrf.mxu2 }
 0x47e   : > { %v1617_v35 = vpop.f32.mrf.mxu3 }
 0x47f   : > { %v1618_v4 = vadd.f32 %v1617_v35, %v1529_v52 }
 0x481   : > { %v1697_v59 = vmax.f32 %v1618_v4, 0.0 }
 0x483   : > { %v1794_v63 = vadd.f32 %v1762_v50, %v1697_v59  ;;  %v1767_v59 = vmax.f32 %v1735_v16, 0.0  ;;  %v1554_v16 = vadd.f32 %v1553_v20, %v3468_v23 }
 0x485   : > { %v1827_v61 = vmul.f32 %v3480_v46, %v1794_v63  ;;  %v3531_v63 = vpop.f32.mrf.mxu1 }
 0x486   : > { %v1619_v42 = vpop.f32.mrf.mxu3 }
 0x487   : > { %v1860_v28 = vadd.f32 %v3484_v26, %v1827_v61  ;;  %v1620_v30 = vadd.f32 %v1619_v42, %v1531_v7  ;;  %v3748_v7 = vld [vmem:[#allocation6_spill] sm:$0xff]  ;;  %v1555_v42 = vpop.f32.mrf.mxu2 }
 0x489   : > { %1892 = vst [vmem:[%s3493_s13] sm:$0xff] %v1860_v28  ;;  %v1698_v8 = vmax.f32 %v1620_v30, 0.0 }
 0x48b   : > { %v1795_v41 = vadd.f32 %v1763_v43, %v1698_v8  ;;  %1661 = vmatmul.bf16.gmra.mxu3 %v3114_v40 }
 0x48d   : > { %v1828_v51 = vmul.f32 %v3480_v46, %v1795_v41  ;;  %v1768_v41 = vmax.f32 %v1736_v24, 0.0  ;;  %v3542_v18 = vpop.f32.mrf.mxu1 }
 0x48e   : > { %v1622_v37 = vpop.f32.mrf.mxu3 }
 0x48f   : > { %v1861_v58 = vadd.f32 %v3484_v26, %v1828_v51  ;;  %v1623_v47 = vadd.f32 %v1622_v37, %v1534_v15  ;;  %v1558_v51 = vpop.f32.mrf.mxu2 }
 0x491   : > { %1893 = vst [vmem:[%s3493_s13 + $0x8] sm:$0xff] %v1861_v58  ;;  %v1699_v14 = vmax.f32 %v1623_v47, 0.0 }
 0x493   : > { %v1796_v40 = vadd.f32 %v1764_v6, %v1699_v14  ;;  %v1769_v14 = vmax.f32 %v1737_v1, 0.0 }
 0x495   : > { %v1829_v2 = vmul.f32 %v3480_v46, %v1796_v40 }
 0x496   : > { %v1624_v22 = vpop.f32.mrf.mxu3 }
 0x497   : > { %v1862_v0 = vadd.f32 %v3484_v26, %v1829_v2  ;;  %v1625_v17 = vadd.f32 %v1624_v22, %v1536_v54  ;;  %v1549_v2 = vadd.f32 %v1548_v5, %v3468_v23  ;;  %v1454_v54 = vpop.f32.mrf.mxu1 }
 0x499   : > { %1894 = vst [vmem:[%s3493_s13 + $0x10] sm:$0xff] %v1862_v0  ;;  %v1700_v31 = vmax.f32 %v1625_v17, 0.0  ;;  %v1560_v0 = vpop.f32.mrf.mxu2 }
 0x49b   : > { %v1797_v56 = vadd.f32 %v1765_v11, %v1700_v31  ;;  %1666 = vmatmul.bf16.gmra.mxu3 %v3746_v10  ;;  %v1770_v31 = vmax.f32 %v1738_v25, 0.0 }
 0x49d   : > { %v1830_v55 = vmul.f32 %v3480_v46, %v1797_v56 }
 0x49e   : > { %v1627_v45 = vpop.f32.mrf.mxu3 }
 0x49f   : > { %v1863_v53 = vadd.f32 %v3484_v26, %v1830_v55  ;;  %v1628_v32 = vadd.f32 %v1627_v45, %v1539_v38  ;;  %v1739_v38 = vadd.f32 %v3470_v49, %v3510_v29  ;;  %v1457_v34 = vpop.f32.mrf.mxu1  ;;  %v1740_v29 = vadd.f32 %v3470_v49, %v3521_v62 }
 0x4a0   : > { %v1556_v62 = vadd.f32 %v1555_v42, %v3468_v23 }
 0x4a1   : > { %1895 = vst [vmem:[%s3493_s13 + $0x18] sm:$0xff] %v1863_v53  ;;  %v1701_v9 = vmax.f32 %v1628_v32, 0.0  ;;  %v1563_v53 = vpop.f32.mrf.mxu2  ;;  %v1771_v32 = vmax.f32 %v1739_v38, 0.0 }
 0x4a3   : > { %v1798_v13 = vadd.f32 %v1766_v3, %v1701_v9 }
 0x4a5   : > { %v1831_v52 = vmul.f32 %v3480_v46, %v1798_v13  ;;  %v3750_v13 = vld [vmem:[#allocation9_spill] sm:$0xff] }
 0x4a6   : > { %v1629_v35 = vpop.f32.mrf.mxu3 }
 0x4a7   : > { %v1864_v4 = vadd.f32 %v3484_v26, %v1831_v52  ;;  %v1630_v50 = vadd.f32 %v1629_v35, %v1541_v33 }
 0x4a9   : > { %1896 = vst [vmem:[%s3493_s13 + $0x20] sm:$0xff] %v1864_v4  ;;  %v1702_v21 = vmax.f32 %v1630_v50, 0.0  ;;  %v1772_v4 = vmax.f32 %v1740_v29, 0.0  ;;  %v1459_v50 = vpop.f32.mrf.mxu1 }
 0x4ab   : > { %v1799_v61 = vadd.f32 %v1767_v59, %v1702_v21  ;;  %1671 = vmatmul.bf16.gmra.mxu3 %v3748_v7  ;;  %v1565_v21 = vpop.f32.mrf.mxu2  ;;  %v1741_v7 = vadd.f32 %v3470_v49, %v3531_v63  ;;  %v1742_v63 = vadd.f32 %v3470_v49, %v3542_v18 }
 0x4ad   : > { %v1832_v28 = vmul.f32 %v3480_v46, %v1799_v61 }
 0x4ae   : > { %v1632_v30 = vpop.f32.mrf.mxu3 }
 0x4af   : > { %v1865_v43 = vadd.f32 %v3484_v26, %v1832_v28  ;;  %v1633_v8 = vadd.f32 %v1632_v30, %v1544_v44  ;;  %v1773_v30 = vmax.f32 %v1741_v7, 0.0 }
 0x4b1   : > { %1897 = vst [vmem:[%s3493_s13 + $0x28] sm:$0xff] %v1865_v43  ;;  %v1703_v15 = vmax.f32 %v1633_v8, 0.0  ;;  %v1462_v8 = vpop.f32.mrf.mxu1 }
 0x4b3   : > { %v1800_v36 = vadd.f32 %v1768_v41, %v1703_v15  ;;  %v3751_v15 = vld [vmem:[#allocation10_spill] sm:$0xff]  ;;  %v1568_v1 = vpop.f32.mrf.mxu2 }
 0x4b5   : > { %v1833_v37 = vmul.f32 %v3480_v46, %v1800_v36  ;;  %v1559_v36 = vadd.f32 %v1558_v51, %v3468_v23 }
 0x4b6   : > { %v1634_v58 = vpop.f32.mrf.mxu3 }
 0x4b7   : > { %v1866_v47 = vadd.f32 %v3484_v26, %v1833_v37  ;;  %v1635_v6 = vadd.f32 %v1634_v58, %v1546_v12 }
 0x4b9   : > { %1898 = vst [vmem:[%s3493_s13 + $0x30] sm:$0xff] %v1866_v47  ;;  %v1704_v40 = vmax.f32 %v1635_v6, 0.0  ;;  %v1774_v47 = vmax.f32 %v1742_v63, 0.0 }
 0x4bb   : > { %v1801_v39 = vadd.f32 %v1769_v14, %v1704_v40  ;;  %1676 = vmatmul.bf16.gmra.mxu3 %v3749_v60  ;;  %v1743_v40 = vadd.f32 %v3470_v49, %v1454_v54  ;;  %v1561_v60 = vadd.f32 %v1560_v0, %v3468_v23  ;;  %v1570_v18 = vpop.f32.mrf.mxu2  ;;  %v1744_v54 = vadd.f32 %v3470_v49, %v1457_v34 }
 0x4bd   : > { %v1834_v22 = vmul.f32 %v3480_v46, %v1801_v39  ;;  %v1464_v39 = vpop.f32.mrf.mxu1 }
 0x4be   : > { %v1637_v19 = vpop.f32.mrf.mxu3 }
 0x4bf   : > { %v1867_v17 = vadd.f32 %v3484_v26, %v1834_v22  ;;  %v1638_v11 = vadd.f32 %v1637_v19, %v1549_v2  ;;  %v1775_v19 = vmax.f32 %v1743_v40, 0.0 }
 0x4c1   : > { %1899 = vst [vmem:[%s3493_s13 + $0x38] sm:$0xff] %v1867_v17  ;;  %v1705_v56 = vmax.f32 %v1638_v11, 0.0 }
 0x4c3   : > { %v1802_v10 = vadd.f32 %v1770_v31, %v1705_v56  ;;  %v3752_v31 = vld [vmem:[#allocation11_spill] sm:$0xff]  ;;  %v1564_v56 = vadd.f32 %v1563_v53, %v3468_v23  ;;  %v1566_v53 = vadd.f32 %v1565_v21, %v3468_v23 }
 0x4c5   : > { %v1835_v5 = vmul.f32 %v3480_v46, %v1802_v10  ;;  %v1467_v0 = vpop.f32.mrf.mxu1 }
 0x4c6   : > { %v1639_v48 = vpop.f32.mrf.mxu3 }
 0x4c7   : > { %v1868_v55 = vadd.f32 %v3484_v26, %v1835_v5  ;;  %v1640_v45 = vadd.f32 %v1639_v48, %v1551_v57  ;;  %v1573_v48 = vpop.f32.mrf.mxu2 }
 0x4c9   : > { %1900 = vst [vmem:[%s3493_s13 + $0x40] sm:$0xff] %v1868_v55  ;;  %v1706_v3 = vmax.f32 %v1640_v45, 0.0  ;;  %v1776_v55 = vmax.f32 %v1744_v54, 0.0 }
 0x4cb   : > { %v1803_v9 = vadd.f32 %v1771_v32, %v1706_v3  ;;  %1681 = vmatmul.bf16.gmra.mxu3 %v3750_v13  ;;  %v1745_v3 = vadd.f32 %v3470_v49, %v1459_v50 }
 0x4cd   : > { %v1836_v27 = vmul.f32 %v3480_v46, %v1803_v9  ;;  %v1777_v29 = vmax.f32 %v1745_v3, 0.0 }
 0x4ce   : > { %v1642_v52 = vpop.f32.mrf.mxu3 }
 0x4cf   : > { %v1869_v33 = vadd.f32 %v3484_v26, %v1836_v27  ;;  %v1643_v35 = vadd.f32 %v1642_v52, %v1554_v16  ;;  %v1469_v27 = vpop.f32.mrf.mxu1 }
 0x4d1   : > { %1901 = vst [vmem:[%s3493_s13 + $0x48] sm:$0xff] %v1869_v33  ;;  %v1707_v59 = vmax.f32 %v1643_v35, 0.0  ;;  %v1575_v33 = vpop.f32.mrf.mxu2 }
 0x4d3   : > { %v1804_v61 = vadd.f32 %v1772_v4, %v1707_v59  ;;  %v1569_v4 = vadd.f32 %v1568_v1, %v3468_v23  ;;  %v1746_v59 = vadd.f32 %v3470_v49, %v1462_v8 }
 0x4d5   : > { %v1837_v20 = vmul.f32 %v3480_v46, %v1804_v61 }
 0x4d6   : > { %v1644_v44 = vpop.f32.mrf.mxu3 }
 0x4d7   : > { %v1870_v24 = vadd.f32 %v3484_v26, %v1837_v20  ;;  %v1645_v28 = vadd.f32 %v1644_v44, %v1556_v62  ;;  %v1778_v20 = vmax.f32 %v1746_v59, 0.0  ;;  %v1472_v44 = vpop.f32.mrf.mxu1 }
 0x4d9   : > { %1902 = vst [vmem:[%s3493_s13 + $0x50] sm:$0xff] %v1870_v24  ;;  %v1708_v43 = vmax.f32 %v1645_v28, 0.0  ;;  %v1578_v28 = vpop.f32.mrf.mxu2 }
 0x4db   : > { %v1805_v41 = vadd.f32 %v1773_v30, %v1708_v43  ;;  %1686 = vmatmul.bf16.gmra.mxu3 %v3751_v15  ;;  %v1747_v30 = vadd.f32 %v3470_v49, %v1464_v39 }
 0x4dd   : > { %v1838_v42 = vmul.f32 %v3480_v46, %v1805_v41  ;;  %v1571_v41 = vadd.f32 %v1570_v18, %v3468_v23  ;;  %v1779_v1 = vmax.f32 %v1747_v30, 0.0  ;;  %v1749_v18 = vadd.f32 %v3470_v49, %v1469_v27 }
 0x4de   : > { %v1647_v37 = vpop.f32.mrf.mxu3 }
 0x4df   : > { %v1871_v12 = vadd.f32 %v3484_v26, %v1838_v42  ;;  %v1648_v58 = vadd.f32 %v1647_v37, %v1559_v36  ;;  %v1574_v37 = vadd.f32 %v1573_v48, %v3468_v23  ;;  %v1781_v54 = vmax.f32 %v1749_v18, 0.0 }
 0x4e1   : > { %1903 = vst [vmem:[%s3493_s13 + $0x58] sm:$0xff] %v1871_v12  ;;  %v1709_v6 = vmax.f32 %v1648_v58, 0.0  ;;  %v1748_v12 = vadd.f32 %v3470_v49, %v1467_v0  ;;  %v1474_v58 = vpop.f32.mrf.mxu1  ;;  %v1579_v0 = vadd.f32 %v1578_v28, %v3468_v23 }
 0x4e3   : > { %v1806_v14 = vadd.f32 %v1774_v47, %v1709_v6 }
 0x4e5   : > { %v1839_v51 = vmul.f32 %v3480_v46, %v1806_v14  ;;  %v1580_v14 = vpop.f32.mrf.mxu2 }
 0x4e6   : > { %v1649_v2 = vpop.f32.mrf.mxu3 }
 0x4e7   : > { %v1872_v25 = vadd.f32 %v3484_v26, %v1839_v51  ;;  %v1650_v22 = vadd.f32 %v1649_v2, %v1561_v60  ;;  %v1780_v51 = vmax.f32 %v1748_v12, 0.0 }
 0x4e9   : > { %1904 = vst [vmem:[%s3493_s13 + $0x60] sm:$0xff] %v1872_v25  ;;  %v1710_v17 = vmax.f32 %v1650_v22, 0.0  ;;  %v1576_v22 = vadd.f32 %v1575_v33, %v3468_v23 }
 0x4eb   : > { %v1807_v11 = vadd.f32 %v1775_v19, %v1710_v17  ;;  %1691 = vmatmul.bf16.gmra.mxu3 %v3752_v31  ;;  %v1477_v17 = vpop.f32.mrf.mxu1 }
 0x4ed   : > { %v1840_v10 = vmul.f32 %v3480_v46, %v1807_v11 }
 0x4ee   : > { %v1652_v38 = vpop.f32.mrf.mxu3 }
 0x4ef   : > { %v1873_v5 = vadd.f32 %v3484_v26, %v1840_v10  ;;  %v1653_v57 = vadd.f32 %v1652_v38, %v1564_v56  ;;  %v1583_v56 = vpop.f32.mrf.mxu2 }
 0x4f1   : > { %1905 = vst [vmem:[%s3493_s13 + $0x68] sm:$0xff] %v1873_v5  ;;  %v1711_v45 = vmax.f32 %v1653_v57, 0.0  ;;  %v1750_v5 = vadd.f32 %v3470_v49, %v1472_v44 }
 0x4f3   : > { %v1808_v32 = vadd.f32 %v1776_v55, %v1711_v45  ;;  %v1479_v3 = vpop.f32.mrf.mxu1 }
 0x4f5   : > { %v1841_v9 = vmul.f32 %v3480_v46, %v1808_v32  ;;  %v1782_v32 = vmax.f32 %v1750_v5, 0.0 }
 0x4f6   : > { %v1654_v34 = vpop.f32.mrf.mxu3 }
 0x4f7   : > { %v1874_v13 = vadd.f32 %v3484_v26, %v1841_v9  ;;  %v1655_v16 = vadd.f32 %v1654_v34, %v1566_v53  ;;  %v1585_v53 = vpop.f32.mrf.mxu2 }
 0x4f9   : > { %1906 = vst [vmem:[%s3493_s13 + $0x70] sm:$0xff] %v1874_v13  ;;  %v1712_v52 = vmax.f32 %v1655_v16, 0.0  ;;  %v1751_v13 = vadd.f32 %v3470_v49, %v1474_v58 }
 0x4fb   : > { %v1809_v35 = vadd.f32 %v1777_v29, %v1712_v52  ;;  %v1581_v29 = vadd.f32 %v1580_v14, %v3468_v23  ;;  %v1482_v59 = vpop.f32.mrf.mxu1 }
 0x4fc   : > { %v1754_v14 = vadd.f32 %v3470_v49, %v1482_v59 }
 0x4fd   : > { %v1842_v50 = vmul.f32 %v3480_v46, %v1809_v35  ;;  %v1783_v35 = vmax.f32 %v1751_v13, 0.0 }
 0x4fe   : > { %v1657_v61 = vpop.f32.mrf.mxu3 }
 0x4ff   : > { %v1875_v21 = vadd.f32 %v3484_v26, %v1842_v50  ;;  %v1658_v7 = vadd.f32 %v1657_v61, %v1569_v4  ;;  %v1584_v61 = vadd.f32 %v1583_v56, %v3468_v23 }
 0x501   : > { %1907 = vst [vmem:[%s3493_s13 + $0x78] sm:$0xff] %v1875_v21  ;;  %v1713_v62 = vmax.f32 %v1658_v7, 0.0  ;;  %v1588_v21 = vpop.f32.mrf.mxu2  ;;  %v1752_v7 = vadd.f32 %v3470_v49, %v1477_v17 }
 0x503   : > { %v1810_v24 = vadd.f32 %v1778_v20, %v1713_v62  ;;  %v1784_v28 = vmax.f32 %v1752_v7, 0.0 }
 0x505   : > { %v1843_v43 = vmul.f32 %v3480_v46, %v1810_v24 }
 0x506   : > { %v1659_v8 = vpop.f32.mrf.mxu3 }
 0x507   : > { %v1876_v15 = vadd.f32 %v3484_v26, %v1843_v43  ;;  %v1660_v36 = vadd.f32 %v1659_v8, %v1571_v41  ;;  %v1753_v41 = vadd.f32 %v3470_v49, %v1479_v3  ;;  %v1484_v8 = vpop.f32.mrf.mxu1 }
 0x508   : > { %v1755_v17 = vadd.f32 %v3470_v49, %v1484_v8 }
 0x509   : > { %1908 = vst [vmem:[%s3493_s13 + $0x80] sm:$0xff] %v1876_v15  ;;  %v1714_v63 = vmax.f32 %v1660_v36, 0.0  ;;  %v1586_v36 = vadd.f32 %v1585_v53, %v3468_v23  ;;  %v1785_v12 = vmax.f32 %v1753_v41, 0.0 }
 0x50b   : > { %v1811_v42 = vadd.f32 %v1779_v1, %v1714_v63  ;;  %v1590_v63 = vpop.f32.mrf.mxu2 }
 0x50d   : > { %v1844_v47 = vmul.f32 %v3480_v46, %v1811_v42 }
 0x50e   : > { %v1662_v6 = vpop.f32.mrf.mxu3 }
 0x50f   : > { %v1877_v40 = vadd.f32 %v3484_v26, %v1844_v47  ;;  %v1663_v39 = vadd.f32 %v1662_v6, %v1574_v37  ;;  %v1589_v6 = vadd.f32 %v1588_v21, %v3468_v23 }
 0x511   : > { %1909 = vst [vmem:[%s3493_s13 + $0x88] sm:$0xff] %v1877_v40  ;;  %v1715_v60 = vmax.f32 %v1663_v39, 0.0 }
 0x513   : > { %v1812_v2 = vadd.f32 %v1780_v51, %v1715_v60  ;;  %v1487_v51 = vpop.f32.mrf.mxu1  ;;  %v1593_v18 = vpop.f32.mrf.mxu2 }
 0x515   : > { %v1845_v25 = vmul.f32 %v3480_v46, %v1812_v2 }
 0x516   : > { %v1664_v19 = vpop.f32.mrf.mxu3 }
 0x517   : > { %v1878_v11 = vadd.f32 %v3484_v26, %v1845_v25  ;;  %v1665_v31 = vadd.f32 %v1664_v19, %v1576_v22  ;;  %v1786_v25 = vmax.f32 %v1754_v14, 0.0 }
 0x519   : > { %1910 = vst [vmem:[%s3493_s13 + $0x90] sm:$0xff] %v1878_v11  ;;  %v1716_v10 = vmax.f32 %v1665_v31, 0.0  ;;  %v1591_v31 = vadd.f32 %v1590_v63, %v3468_v23 }
 0x51b   : > { %v1813_v38 = vadd.f32 %v1781_v54, %v1716_v10 }
 0x51d   : > { %v1846_v57 = vmul.f32 %v3480_v46, %v1813_v38  ;;  %v1787_v38 = vmax.f32 %v1755_v17, 0.0 }
 0x51e   : > { %v1667_v48 = vpop.f32.mrf.mxu3 }
 0x51f   : > { %v1879_v55 = vadd.f32 %v3484_v26, %v1846_v57  ;;  %v1668_v45 = vadd.f32 %v1667_v48, %v1579_v0  ;;  %v1489_v0 = vpop.f32.mrf.mxu1  ;;  %v1595_v57 = vpop.f32.mrf.mxu2 }
 0x521   : > { %1911 = vst [vmem:[%s3493_s13 + $0x98] sm:$0xff] %v1879_v55  ;;  %v1717_v9 = vmax.f32 %v1668_v45, 0.0  ;;  %v1594_v55 = vadd.f32 %v1593_v18, %v3468_v23  ;;  %v1756_v45 = vadd.f32 %v3470_v49, %v1487_v51 }
 0x523   : > { %v1814_v34 = vadd.f32 %v1782_v32, %v1717_v9 }
 0x525   : > { %v1847_v16 = vmul.f32 %v3480_v46, %v1814_v34  ;;  %v1788_v34 = vmax.f32 %v1756_v45, 0.0 }
 0x526   : > { %v1669_v27 = vpop.f32.mrf.mxu3 }
 0x527   : > { %v1880_v52 = vadd.f32 %v3484_v26, %v1847_v16  ;;  %v1670_v33 = vadd.f32 %v1669_v27, %v1581_v29  ;;  %v1492_v16 = vpop.f32.mrf.mxu1  ;;  %v1598_v27 = vpop.f32.mrf.mxu2 }
 0x529   : > { %1912 = vst [vmem:[%s3493_s13 + $0xa0] sm:$0xff] %v1880_v52  ;;  %v1718_v4 = vmax.f32 %v1670_v33, 0.0  ;;  %v1757_v52 = vadd.f32 %v3470_v49, %v1489_v0 }
 0x52b   : > { %v1815_v50 = vadd.f32 %v1783_v35, %v1718_v4  ;;  %v1596_v35 = vadd.f32 %v1595_v57, %v3468_v23 }
 0x52d   : > { %v1848_v20 = vmul.f32 %v3480_v46, %v1815_v50 }
 0x52e   : > { %v1672_v62 = vpop.f32.mrf.mxu3 }
 0x52f   : > { %v1881_v44 = vadd.f32 %v3484_v26, %v1848_v20  ;;  %v1673_v24 = vadd.f32 %v1672_v62, %v1584_v61  ;;  %v1789_v61 = vmax.f32 %v1757_v52, 0.0  ;;  %v1599_v20 = vadd.f32 %v1598_v27, %v3468_v23 }
 0x530   : > { %v1758_v62 = vadd.f32 %v3470_v49, %v1492_v16 }
 0x531   : > { %1913 = vst [vmem:[%s3493_s13 + $0xa8] sm:$0xff] %v1881_v44  ;;  %v1719_v30 = vmax.f32 %v1673_v24, 0.0  ;;  %v1494_v44 = vpop.f32.mrf.mxu1 }
 0x532   : > { %v1790_v8 = vmax.f32 %v1758_v62, 0.0 }
 0x533   : > { %v1816_v43 = vadd.f32 %v1784_v28, %v1719_v30  ;;  %v1600_v30 = vpop.f32.mrf.mxu2 }
 0x535   : > { %v1849_v15 = vmul.f32 %v3480_v46, %v1816_v43 }
 0x536   : > { %v1674_v1 = vpop.f32.mrf.mxu3 }
 0x537   : > { %v1882_v42 = vadd.f32 %v3484_v26, %v1849_v15  ;;  %v1675_v37 = vadd.f32 %v1674_v1, %v1586_v36  ;;  %v1759_v1 = vadd.f32 %v3470_v49, %v1494_v44 }
 0x539   : > { %1914 = vst [vmem:[%s3493_s13 + $0xb0] sm:$0xff] %v1882_v42  ;;  %v1720_v58 = vmax.f32 %v1675_v37, 0.0  ;;  %v1601_v42 = vadd.f32 %v1600_v30, %v3468_v23  ;;  %v1791_v14 = vmax.f32 %v1759_v1, 0.0 }
 0x53b   : > { %v1817_v47 = vadd.f32 %v1785_v12, %v1720_v58 }
 0x53d   : > { %v1850_v40 = vmul.f32 %v3480_v46, %v1817_v47  ;;  %v1497_v47 = vpop.f32.mrf.mxu1 }
 0x53e   : > { %v1677_v39 = vpop.f32.mrf.mxu3 }
 0x53f   : > { %v1883_v60 = vadd.f32 %v3484_v26, %v1850_v40  ;;  %v1678_v2 = vadd.f32 %v1677_v39, %v1589_v6  ;;  %v1603_v6 = vpop.f32.mrf.mxu2 }
 0x540   : > { %v1604_v51 = vadd.f32 %v1603_v6, %v3468_v23 }
 0x541   : > { %1915 = vst [vmem:[%s3493_s13 + $0xb8] sm:$0xff] %v1883_v60  ;;  %v1721_v22 = vmax.f32 %v1678_v2, 0.0  ;;  %v1760_v60 = vadd.f32 %v3470_v49, %v1497_v47 }
 0x543   : > { %v1818_v19 = vadd.f32 %v1786_v25, %v1721_v22 }
 0x545   : > { %v1851_v11 = vmul.f32 %v3480_v46, %v1818_v19  ;;  %v1792_v19 = vmax.f32 %v1760_v60, 0.0 }
 0x546   : > { %v1679_v56 = vpop.f32.mrf.mxu3 }
 0x547   : > { %v1884_v54 = vadd.f32 %v3484_v26, %v1851_v11  ;;  %v1680_v10 = vadd.f32 %v1679_v56, %v1591_v31  ;;  %v1499_v11 = vpop.f32.mrf.mxu1  ;;  %v1605_v31 = vpop.f32.mrf.mxu2 }
 0x549   : > { %1916 = vst [vmem:[%s3493_s13 + $0xc0] sm:$0xff] %v1884_v54  ;;  %v1722_v5 = vmax.f32 %v1680_v10, 0.0  ;;  %v1761_v54 = vadd.f32 %v3470_v49, %v1499_v11 }
 0x54b   : > { %v1819_v48 = vadd.f32 %v1787_v38, %v1722_v5  ;;  %v1606_v38 = vadd.f32 %v1605_v31, %v3468_v23 }
 0x54d   : > { %v1852_v32 = vmul.f32 %v3480_v46, %v1819_v48  ;;  %v1793_v48 = vmax.f32 %v1761_v54, 0.0 }
 0x54e   : > { %v1682_v3 = vpop.f32.mrf.mxu3 }
 0x54f   : > { %v1885_v9 = vadd.f32 %v3484_v26, %v1852_v32  ;;  %v1683_v53 = vadd.f32 %v1682_v3, %v1594_v55 }
 0x551   : > { %1917 = vst [vmem:[%s3493_s13 + $0xc8] sm:$0xff] %v1885_v9  ;;  %v1723_v13 = vmax.f32 %v1683_v53, 0.0 }
 0x553   : > { %v1820_v29 = vadd.f32 %v1788_v34, %v1723_v13 }
 0x555   : > { %v1853_v33 = vmul.f32 %v3480_v46, %v1820_v29 }
 0x556   : > { %v1684_v4 = vpop.f32.mrf.mxu3 }
 0x557   : > { %v1886_v59 = vadd.f32 %v3484_v26, %v1853_v33  ;;  %v1685_v50 = vadd.f32 %v1684_v4, %v1596_v35 }
 0x559   : > { %1918 = vst [vmem:[%s3493_s13 + $0xd0] sm:$0xff] %v1886_v59  ;;  %v1724_v21 = vmax.f32 %v1685_v50, 0.0 }
 0x55b   : > { %v1821_v7 = vadd.f32 %v1789_v61, %v1724_v21 }
 0x55d   : > { %v1854_v24 = vmul.f32 %v3480_v46, %v1821_v7 }
 0x55e   : > { %v1687_v28 = vpop.f32.mrf.mxu3 }
 0x55f   : > { %v1887_v43 = vadd.f32 %v3484_v26, %v1854_v24  ;;  %v1688_v41 = vadd.f32 %v1687_v28, %v1599_v20 }
 0x561   : > { %1919 = vst [vmem:[%s3493_s13 + $0xd8] sm:$0xff] %v1887_v43  ;;  %v1725_v15 = vmax.f32 %v1688_v41, 0.0 }
 0x563   : > { %v1822_v36 = vadd.f32 %v1790_v8, %v1725_v15 }
 0x565   : > { %v1855_v63 = vmul.f32 %v3480_v46, %v1822_v36 }
 0x566   : > { %v1689_v37 = vpop.f32.mrf.mxu3 }
 0x567   : > { %v1888_v12 = vadd.f32 %v3484_v26, %v1855_v63  ;;  %v1690_v58 = vadd.f32 %v1689_v37, %v1601_v42 }
 0x569   : > { %1920 = vst [vmem:[%s3493_s13 + $0xe0] sm:$0xff] %v1888_v12  ;;  %v1726_v40 = vmax.f32 %v1690_v58, 0.0 }
 0x56b   : > { %v1823_v39 = vadd.f32 %v1791_v14, %v1726_v40 }
 0x56d   : > { %v1856_v2 = vmul.f32 %v3480_v46, %v1823_v39 }
 0x56e   : > { %v1692_v18 = vpop.f32.mrf.mxu3 }
 0x56f   : > { %v1889_v25 = vadd.f32 %v3484_v26, %v1856_v2  ;;  %v1693_v22 = vadd.f32 %v1692_v18, %v1604_v51 }
 0x571   : > { %1921 = vst [vmem:[%s3493_s13 + $0xe8] sm:$0xff] %v1889_v25  ;;  %v1727_v17 = vmax.f32 %v1693_v22, 0.0 }
 0x573   : > { %v1824_v56 = vadd.f32 %v1792_v19, %v1727_v17 }
 0x575   : > { %v1857_v10 = vmul.f32 %v3480_v46, %v1824_v56 }
 0x576   : > { %v1694_v0 = vpop.f32.mrf.mxu3 }
 0x577   : > { %v1890_v5 = vadd.f32 %v3484_v26, %v1857_v10  ;;  %v1695_v57 = vadd.f32 %v1694_v0, %v1606_v38 }
 0x579   : > { %1922 = vst [vmem:[%s3493_s13 + $0xf0] sm:$0xff] %v1890_v5  ;;  %v1728_v55 = vmax.f32 %v1695_v57, 0.0 }
 0x57b   : > { %v1825_v49 = vadd.f32 %v1793_v48, %v1728_v55 }
 0x57d   : > { %v1858_v23 = vmul.f32 %v3480_v46, %v1825_v49 }
 0x57f   : > { %v1891_v45 = vadd.f32 %v3484_v26, %v1858_v23 }
 0x581   : > { %1923 = vst [vmem:[%s3493_s13 + $0xf8] sm:$0xff] %v1891_v45 }
 0x582   : > { %2516 = shalt.err (!%p2513_p3)
}
 0x583   : > { %s2553_s10 = smov 128   ;;  %s2554_s11 = smov 8  }
 0x584   : > { %2448 = dma.vmem_to_hbm [thread:$0]  (%p2618_p5), %s1938_s27, 4096, %s1940_s28, %s1925_s19, %s2553_s10, %s2553_s10, %s2554_s11  }
 0x585 PF: > { %p2454_p4 = scmp.ge.s32.totalorder %s2551_s18, 2  ;;  %s1954_s12 = sand.u32 1, %s2539_s15  }
 0x586   : > { %s1955_s13 = scalar_lea.sflag [#allocation3], %s1954_s12 }
 0x587   : > { %p2451_p7 = pnand %p2454_p4, %p2622_p6 }
 0x589   : > { %p2452_p8 = pneg %p2451_p7 }
 0x58b   : > { %2534 = dma.done.wait (%p2452_p8), %s1955_s13, 4096  }
 0x58c   : > { %2536 = vsyncadd (%p2452_p8), %s1955_s13, 4294963200  ;;  %p14_p9 = scmp.ge.s32.totalorder %s2605_s21, 6   ;;  %s3753_s15 = smov %s2543_s16 }
 0x58d   : > { %s3754_s16 = smov %s2547_s17  ;;  %s3755_s17 = smov %s2616_s24 }
 0x58e   : > { %s3756_s18 = smov %s2605_s21  ;;  %16 = sbr.rel (!%p14_p9) target bundleno = 3 (0x3), region = 76 }
 0x593   :  { %1961 = vsyncpa [#allocation3], 1 }
 0x594   :  { %1963 = vsyncpa [#allocation3 + $0x1], 1 }

</bundles_post_ra>
